<compile_context>
chip_gen: v7x
topology: tpu7x:2x2x1
jax: 0.10.0
libtpu: 0.0.40
codegen_flags: <defaults>
</compile_context>

<pallas_src>
import functools

import numpy as np

import jax
import jax.numpy as jnp
from jax import lax
from jax.experimental import pallas as pl
from jax.experimental.pallas import tpu as pltpu


def _rup(x, m):
    return -(-x // m) * m


# ----------------------------------------------------------------------------
# Parameter setup (plain JAX glue, mirrors DiracConv.transform_weight)
# ----------------------------------------------------------------------------
def make_dirac_delta(out_channels, in_channels, kh, kw, dtype=jnp.float32):
    """Equivalent of torch.nn.init.dirac_ for a groups=1 Conv2d weight."""
    delta = jnp.zeros((out_channels, in_channels, kh, kw), dtype)
    m = min(out_channels, in_channels)
    idx = jnp.arange(m)
    return delta.at[idx, idx, kh // 2, kw // 2].set(1.0)


def transform_weight(weight, alpha, beta, delta, eps=1e-12):
    """alpha * delta + beta * F.normalize(weight.view(Cout, -1)).view_as(weight)."""
    cout = weight.shape[0]
    w_flat = weight.reshape(cout, -1)
    norm = jnp.sqrt(jnp.sum(w_flat * w_flat, axis=1, keepdims=True))
    w_norm = (w_flat / jnp.maximum(norm, eps)).reshape(weight.shape)
    v = (-1,) + (1,) * (weight.ndim - 1)
    return alpha.reshape(v) * delta + beta.reshape(v) * w_norm


# ----------------------------------------------------------------------------
# Pallas kernel (stride=1, dilation=1; padding prepared by the wrapper)
# ----------------------------------------------------------------------------
def _dirac_conv2d_kernel(x_ref, w_ref, o_ref, *, kh, kw, n_co, fused):
    """One grid step: one (tile_h, Wo_pad, tcout) output block.

    x_ref : (1, tile_h + kh - 1, Wp, Cin)   compute_dtype (bf16 default)
    w_ref : (KH*KW*n_co, Cin, tcout)        compute_dtype, resident (1 DMA)
    o_ref : (1, tile_h, Wo_pad, tcout)      f32
    """
    _, th, wo, tcout = o_ref.shape
    cin = x_ref.shape[-1]
    c = pl.program_id(1)                               # Cout-tile index

    if fused:
        # Lane-aligned (cin % 128 == 0): build the im2col slab once and do a
        # single MXU dot with K = KH*KW*Cin.
        taps = [x_ref[0, dy:dy + th, dx:dx + wo, :].reshape(th * wo, cin)
                for dy in range(kh) for dx in range(kw)]
        patch = jnp.concatenate(taps, axis=-1)                       # (M, K)
        w2 = jnp.concatenate([w_ref[t * n_co + c] for t in range(kh * kw)],
                             axis=0)                                 # (K, tcout)
        acc = jnp.dot(patch, w2, preferred_element_type=jnp.float32)
    else:
        # Small / unaligned Cin: per-tap matmuls (K = Cin each), f32 accumulate.
        acc = jnp.zeros((th * wo, tcout), jnp.float32)
        for dy in range(kh):
            for dx in range(kw):
                patch = x_ref[0, dy:dy + th, dx:dx + wo, :].reshape(th * wo, cin)
                wt = w_ref[(dy * kw + dx) * n_co + c]                # (Cin, tcout)
                acc = acc + jnp.dot(patch, wt,
                                    preferred_element_type=jnp.float32)

    o_ref[0] = acc.reshape(th, wo, tcout).astype(o_ref.dtype)


# ----------------------------------------------------------------------------
# VMEM budgeting (models lane/sublane padding + in-kernel temporaries)
# ----------------------------------------------------------------------------
def _vmem_limit_bytes():
    phys = 64 * 1024 * 1024                    # conservative default (v7x: 64 MiB/TC)
    try:
        phys = int(pltpu.get_tpu_info().vmem_capacity_bytes)
    except Exception:
        pass
    # ~48 MiB on v7x, ~96 MiB on v5e/v6e; leave headroom for compiler scratch.
    return int(min(phys * 3 // 4, 96 * 1024 * 1024))


def _prefers_128_mxu():
    try:
        kind = jax.devices()[0].device_kind.lower()
        return ("v2" in kind) or ("v3" in kind) or ("v4" in kind) or ("v5" in kind)
    except Exception:
        return False


def _tile_bytes(th, halo, wp, wo_pad, cin, tcout, n_co, kh, kw, in_itemsize, fused):
    sub_in = 8 * (4 // in_itemsize)            # sublane packing: f32 -> 8, bf16 -> 16
    cin_l = _rup(cin, 128)
    tcout_l = _rup(tcout, 128)
    hp = th + halo
    m = th * wo_pad
    in_b = 2 * hp * _rup(wp, sub_in) * cin_l * in_itemsize            # 2x input buffer
    out_b = 2 * th * _rup(wo_pad, 8) * tcout_l * 4                    # 2x f32 output buffer
    w_b = 2 * kh * kw * n_co * _rup(cin, sub_in) * tcout_l * in_itemsize
    acc_b = _rup(m, 8) * tcout_l * 4                                  # f32 accumulator
    if fused:
        tmp_b = 2 * _rup(m, sub_in) * _rup(kh * kw * cin, 128) * in_itemsize
    else:
        tmp_b = 4 * _rup(m, sub_in) * cin_l * in_itemsize             # live tap patches
    return in_b + out_b + w_b + acc_b + tmp_b


def _auto_tile_h(ho, wo_pad, wp, cin, tcout, n_co, halo, kh, kw,
                 in_itemsize, vmem_limit, fused):
    budget = int(vmem_limit * 0.7)
    th = max(8, _rup(ho, 8))
    while True:
        if _tile_bytes(th, halo, wp, wo_pad, cin, tcout, n_co, kh, kw,
                       in_itemsize, fused) <= budget:
            return th
        if th <= 8:
            # TODO(synk): add W-axis tiling for rows too wide for VMEM at th=8.
            raise ValueError(
                "DiracConv2d Pallas kernel: an 8-row tile does not fit the "
                "VMEM budget; W tiling is not implemented.")
        th = max(8, _rup(th // 2, 8))


# ----------------------------------------------------------------------------
# Wrapper
# ----------------------------------------------------------------------------
@functools.partial(jax.jit,
                   static_argnames=("padding", "tile_h", "fuse_taps",
                                    "compute_dtype"))
def dirac_conv2d(x_nchw, weight, alpha, beta, delta, padding=1, tile_h=None,
                 fuse_taps=True, compute_dtype=jnp.bfloat16):
    """Forward of DiracConv2d (stride=1, dilation=1, groups=1, bias=False).

    compute_dtype: precision of the matmul operands (accumulation is always
    f32).  Default bf16; pass jnp.float32 for full f32 numerics.
    """
    # Effective weight (parameter setup, plain JAX, f32).
    w_eff = transform_weight(weight, alpha, beta, delta)     # (Cout, Cin, KH, KW)

    n, cin, h, w = x_nchw.shape
    cout, _, kh, kw = w_eff.shape
    ho = h + 2 * padding - (kh - 1)
    wo = w + 2 * padding - (kw - 1)
    halo = kh - 1

    # Lane/sublane friendly output geometry.
    wo_pad = _rup(wo, 8)                      # unmasked second-minor stores
    wp = wo_pad + kw - 1                      # padded input width
    cout_pad = _rup(max(cout, 128), 128)      # lane-dense output channels

    # Generation-aware Cout tile (256-wide MXU on v6e/v7x, 128 on v4/v5).
    tcout = 256 if (cout_pad % 256 == 0 and not _prefers_128_mxu()) else 128
    tcout = min(tcout, cout_pad)
    n_co = cout_pad // tcout

    in_itemsize = int(np.dtype(compute_dtype).itemsize)
    # Fused single-dot im2col only when the concat chunks are lane-aligned.
    fused = bool(fuse_taps) and (cin % 128 == 0)

    vmem_limit = _vmem_limit_bytes()
    if tile_h is None:
        tile_h = _auto_tile_h(ho, wo_pad, wp, cin, tcout, n_co, halo, kh, kw,
                              in_itemsize, vmem_limit, fused)
    tile_h = max(8, _rup(min(int(tile_h), _rup(ho, 8)), 8))
    n_h = -(-ho // tile_h)
    ho_pad = n_h * tile_h
    hp_tile = tile_h + halo

    # Input pack (single fused XLA pass): NCHW f32 -> NHWC compute_dtype,
    # conv + alignment padding, halo'd H tiles.  Halo duplication is
    # (kh-1)/tile_h, negligible for the large tiles chosen above.
    x_nhwc = jnp.transpose(x_nchw.astype(compute_dtype), (0, 2, 3, 1))
    x_pad = jnp.pad(
        x_nhwc,
        ((0, 0),
         (padding, padding + (ho_pad - ho)),
         (padding, wp - w - padding),
         (0, 0)))
    x_tiles = jnp.stack(
        [x_pad[:, t * tile_h: t * tile_h + hp_tile] for t in range(n_h)], axis=1)
    x_tiles = x_tiles.reshape(n * n_h, hp_tile, wp, cin)      # (NT, TH+halo, Wp, Cin)

    # Weights: OIHW -> HWIO -> (KH*KW*n_co, Cin, tcout), compute_dtype, resident.
    w_hwio = jnp.transpose(w_eff, (2, 3, 1, 0))               # (KH, KW, Cin, Cout)
    w_hwio = jnp.pad(w_hwio, ((0, 0), (0, 0), (0, 0), (0, cout_pad - cout)))
    w_tiles = w_hwio.reshape(kh * kw, cin, n_co, tcout)
    w_tiles = jnp.transpose(w_tiles, (0, 2, 1, 3))            # (KH*KW, n_co, Cin, tcout)
    w_tiles = w_tiles.reshape(kh * kw * n_co, cin, tcout).astype(compute_dtype)

    kernel = functools.partial(_dirac_conv2d_kernel, kh=kh, kw=kw, n_co=n_co,
                               fused=fused)

    flops = 2 * n * ho * wo * cout * kh * kw * cin
    bytes_accessed = (x_tiles.size * in_itemsize + w_tiles.size * in_itemsize
                      + n * ho * wo * cout * 4)

    out = pl.pallas_call(
        kernel,
        out_shape=jax.ShapeDtypeStruct((n * n_h, tile_h, wo_pad, cout_pad),
                                       x_nchw.dtype),
        grid_spec=pltpu.PrefetchScalarGridSpec(
            num_scalar_prefetch=0,
            grid=(n * n_h, n_co),
            in_specs=[
                # Halo'd input H-tile; constant across the Cout axis, so the
                # pipeline fetches it exactly once per g.
                pl.BlockSpec((1, hp_tile, wp, cin), lambda g, c: (g, 0, 0, 0)),
                # Whole weight as one resident block (constant index: one DMA,
                # never re-fetched at g boundaries).
                pl.BlockSpec((kh * kw * n_co, cin, tcout),
                             lambda g, c: (0, 0, 0)),
            ],
            out_specs=pl.BlockSpec((1, tile_h, wo_pad, tcout),
                                   lambda g, c: (g, 0, 0, c)),
        ),
        compiler_params=pltpu.CompilerParams(
            # Megacore (v7x) shards the batch*H-tile axis; the Cout axis stays
            # sequential so each core keeps the input-block reuse.
            dimension_semantics=("parallel", "arbitrary"),
            vmem_limit_bytes=vmem_limit),
        cost_estimate=pl.CostEstimate(flops=flops, transcendentals=0,
                                      bytes_accessed=bytes_accessed),
    )(x_tiles, w_tiles)

    # (N*n_h, TH, Wo_pad, Cout_pad) -> (N, Ho, Wo, Cout) -> NCHW
    out = out.reshape(n, ho_pad, wo_pad, cout_pad)[:, :ho, :wo, :cout]
    return jnp.transpose(out, (0, 3, 1, 2))


# ----------------------------------------------------------------------------
# Demo / correctness check
# ----------------------------------------------------------------------------
if __name__ == "__main__":
    key = jax.random.PRNGKey(0)
    k_x, k_w = jax.random.split(key)

    N, Cin, Cout, H, W = 2, 4, 4, 16, 16
    KH = KW = 3

    x = jax.random.normal(k_x, (N, Cin, H, W), dtype=jnp.float32)
    # Deterministic stand-in for Conv2d's default (kaiming-uniform) weight init.
    bound = 1.0 / (Cin * KH * KW) ** 0.5
    weight = jax.random.uniform(k_w, (Cout, Cin, KH, KW),
                                minval=-bound, maxval=bound, dtype=jnp.float32)
    alpha = jnp.ones((Cout,), jnp.float32)
    beta = jnp.full((Cout,), 0.1, jnp.float32)
    delta = make_dirac_delta(Cout, Cin, KH, KW)

    # References.  The kernel multiplies in bf16 (f32 accumulation), so check
    # tightly against a bf16-rounded reference and loosely against pure f32.
    w_eff = transform_weight(weight, alpha, beta, delta)
    x_bf = x.astype(jnp.bfloat16).astype(jnp.float32)
    w_bf = w_eff.astype(jnp.bfloat16).astype(jnp.float32)
    y_ref_bf = lax.conv_general_dilated(
        x_bf, w_bf, window_strides=(1, 1), padding=((1, 1), (1, 1)),
        dimension_numbers=("NCHW", "OIHW", "NCHW"),
        precision=lax.Precision.HIGHEST)
    y_ref_f32 = lax.conv_general_dilated(
        x, w_eff, window_strides=(1, 1), padding=((1, 1), (1, 1)),
        dimension_numbers=("NCHW", "OIHW", "NCHW"),
        precision=lax.Precision.HIGHEST)

    # 1) tile_h=8 so the H-tiling / halo path is actually exercised (2 tiles).
    y = jax.block_until_ready(
        dirac_conv2d(x, weight, alpha, beta, delta, padding=1, tile_h=8))
    assert y.shape == (N, Cout, H, W)
    assert jnp.allclose(y, y_ref_bf, atol=1e-3, rtol=1e-3), (
        float(jnp.max(jnp.abs(y - y_ref_bf))))
    assert jnp.allclose(y, y_ref_f32, atol=5e-2, rtol=5e-2), (
        float(jnp.max(jnp.abs(y - y_ref_f32))))

    # 2) default path: auto tile sizer (single tile here) + generation probing.
    y_auto = jax.block_until_ready(
        dirac_conv2d(x, weight, alpha, beta, delta, padding=1))
    assert y_auto.shape == (N, Cout, H, W)
    assert jnp.allclose(y_auto, y_ref_bf, atol=1e-3, rtol=1e-3), (
        float(jnp.max(jnp.abs(y_auto - y_ref_bf))))

    print("KERNEL_OK")
</pallas_src>

<mosaic_0001>
module attributes {stable_mosaic.version = 11 : i64} {
  func.func @_dirac_conv2d_kernel(%arg0: i32, %arg1: i32, %arg2: memref<1x10x18x4xbf16, #tpu.memory_space<vmem>>, %arg3: memref<9x4x128xbf16, #tpu.memory_space<vmem>>, %arg4: memref<1x8x16x128xf32, #tpu.memory_space<vmem>>) attributes {dimension_semantics = [#tpu.dimension_semantics<parallel>, #tpu.dimension_semantics<arbitrary>], iteration_bounds = array<i64: 4, 1>, scalar_prefetch = 0 : i64, scratch_operands = 0 : i64, tpu.core_type = #tpu.core_type<tc>, window_params = [{transform_indices = @transform_0, window_bounds = array<i64: 1, 10, 18, 4>}, {pipeline_mode = #tpu.pipeline_mode<synchronous>, transform_indices = @transform_1, window_bounds = array<i64: 9, 4, 128>}, {transform_indices = @transform_2, window_bounds = array<i64: 1, 8, 16, 128>}]} {
    %cst = arith.constant 0.000000e+00 : f32
    %0 = vector.broadcast %cst : f32 to vector<128x128xf32>
    %c0 = arith.constant 0 : index
    %c0_0 = arith.constant 0 : index
    %c0_1 = arith.constant 0 : index
    %c0_2 = arith.constant 0 : index
    %1 = vector.load %arg2[%c0, %c0_0, %c0_1, %c0_2] : memref<1x10x18x4xbf16, #tpu.memory_space<vmem>>, vector<1x8x16x4xbf16>
    %2 = vector.shape_cast %1 : vector<1x8x16x4xbf16> to vector<8x16x4xbf16>
    %3 = vector.shape_cast %2 : vector<8x16x4xbf16> to vector<128x4xbf16>
    %c0_i32 = arith.constant 0 : i32
    %4 = arith.addi %c0_i32, %arg1 : i32
    %5 = arith.index_cast %4 : i32 to index
    %c0_3 = arith.constant 0 : index
    %c0_4 = arith.constant 0 : index
    %6 = vector.load %arg3[%5, %c0_3, %c0_4] : memref<9x4x128xbf16, #tpu.memory_space<vmem>>, vector<1x4x128xbf16>
    %7 = vector.shape_cast %6 : vector<1x4x128xbf16> to vector<4x128xbf16>
    %cst_5 = arith.constant dense<0.000000e+00> : vector<128x128xf32>
    %8 = tpu.matmul %3, %7, %cst_5 {dimension_numbers = #tpu.dot_dimension_numbers<[1], [0], [0], [1], [0, 0, 1, 1], [], []>} : vector<128x4xbf16>, vector<4x128xbf16>, vector<128x128xf32> -> vector<128x128xf32>
    %9 = arith.addf %0, %8 : vector<128x128xf32>
    %c0_6 = arith.constant 0 : index
    %c0_7 = arith.constant 0 : index
    %c1 = arith.constant 1 : index
    %c0_8 = arith.constant 0 : index
    %10 = vector.load %arg2[%c0_6, %c0_7, %c1, %c0_8] : memref<1x10x18x4xbf16, #tpu.memory_space<vmem>>, vector<1x8x16x4xbf16>
    %11 = vector.shape_cast %10 : vector<1x8x16x4xbf16> to vector<8x16x4xbf16>
    %12 = vector.shape_cast %11 : vector<8x16x4xbf16> to vector<128x4xbf16>
    %c1_i32 = arith.constant 1 : i32
    %13 = arith.addi %c1_i32, %arg1 : i32
    %14 = arith.index_cast %13 : i32 to index
    %c0_9 = arith.constant 0 : index
    %c0_10 = arith.constant 0 : index
    %15 = vector.load %arg3[%14, %c0_9, %c0_10] : memref<9x4x128xbf16, #tpu.memory_space<vmem>>, vector<1x4x128xbf16>
    %16 = vector.shape_cast %15 : vector<1x4x128xbf16> to vector<4x128xbf16>
    %cst_11 = arith.constant dense<0.000000e+00> : vector<128x128xf32>
    %17 = tpu.matmul %12, %16, %cst_11 {dimension_numbers = #tpu.dot_dimension_numbers<[1], [0], [0], [1], [0, 0, 1, 1], [], []>} : vector<128x4xbf16>, vector<4x128xbf16>, vector<128x128xf32> -> vector<128x128xf32>
    %18 = arith.addf %9, %17 : vector<128x128xf32>
    %c0_12 = arith.constant 0 : index
    %c0_13 = arith.constant 0 : index
    %c2 = arith.constant 2 : index
    %c0_14 = arith.constant 0 : index
    %19 = vector.load %arg2[%c0_12, %c0_13, %c2, %c0_14] : memref<1x10x18x4xbf16, #tpu.memory_space<vmem>>, vector<1x8x16x4xbf16>
    %20 = vector.shape_cast %19 : vector<1x8x16x4xbf16> to vector<8x16x4xbf16>
    %21 = vector.shape_cast %20 : vector<8x16x4xbf16> to vector<128x4xbf16>
    %c2_i32 = arith.constant 2 : i32
    %22 = arith.addi %c2_i32, %arg1 : i32
    %23 = arith.index_cast %22 : i32 to index
    %c0_15 = arith.constant 0 : index
    %c0_16 = arith.constant 0 : index
    %24 = vector.load %arg3[%23, %c0_15, %c0_16] : memref<9x4x128xbf16, #tpu.memory_space<vmem>>, vector<1x4x128xbf16>
    %25 = vector.shape_cast %24 : vector<1x4x128xbf16> to vector<4x128xbf16>
    %cst_17 = arith.constant dense<0.000000e+00> : vector<128x128xf32>
    %26 = tpu.matmul %21, %25, %cst_17 {dimension_numbers = #tpu.dot_dimension_numbers<[1], [0], [0], [1], [0, 0, 1, 1], [], []>} : vector<128x4xbf16>, vector<4x128xbf16>, vector<128x128xf32> -> vector<128x128xf32>
    %27 = arith.addf %18, %26 : vector<128x128xf32>
    %c0_18 = arith.constant 0 : index
    %c1_19 = arith.constant 1 : index
    %c0_20 = arith.constant 0 : index
    %c0_21 = arith.constant 0 : index
    %28 = vector.load %arg2[%c0_18, %c1_19, %c0_20, %c0_21] : memref<1x10x18x4xbf16, #tpu.memory_space<vmem>>, vector<1x8x16x4xbf16>
    %29 = vector.shape_cast %28 : vector<1x8x16x4xbf16> to vector<8x16x4xbf16>
    %30 = vector.shape_cast %29 : vector<8x16x4xbf16> to vector<128x4xbf16>
    %c3_i32 = arith.constant 3 : i32
    %31 = arith.addi %c3_i32, %arg1 : i32
    %32 = arith.index_cast %31 : i32 to index
    %c0_22 = arith.constant 0 : index
    %c0_23 = arith.constant 0 : index
    %33 = vector.load %arg3[%32, %c0_22, %c0_23] : memref<9x4x128xbf16, #tpu.memory_space<vmem>>, vector<1x4x128xbf16>
    %34 = vector.shape_cast %33 : vector<1x4x128xbf16> to vector<4x128xbf16>
    %cst_24 = arith.constant dense<0.000000e+00> : vector<128x128xf32>
    %35 = tpu.matmul %30, %34, %cst_24 {dimension_numbers = #tpu.dot_dimension_numbers<[1], [0], [0], [1], [0, 0, 1, 1], [], []>} : vector<128x4xbf16>, vector<4x128xbf16>, vector<128x128xf32> -> vector<128x128xf32>
    %36 = arith.addf %27, %35 : vector<128x128xf32>
    %c0_25 = arith.constant 0 : index
    %c1_26 = arith.constant 1 : index
    %c1_27 = arith.constant 1 : index
    %c0_28 = arith.constant 0 : index
    %37 = vector.load %arg2[%c0_25, %c1_26, %c1_27, %c0_28] : memref<1x10x18x4xbf16, #tpu.memory_space<vmem>>, vector<1x8x16x4xbf16>
    %38 = vector.shape_cast %37 : vector<1x8x16x4xbf16> to vector<8x16x4xbf16>
    %39 = vector.shape_cast %38 : vector<8x16x4xbf16> to vector<128x4xbf16>
    %c4_i32 = arith.constant 4 : i32
    %40 = arith.addi %c4_i32, %arg1 : i32
    %41 = arith.index_cast %40 : i32 to index
    %c0_29 = arith.constant 0 : index
    %c0_30 = arith.constant 0 : index
    %42 = vector.load %arg3[%41, %c0_29, %c0_30] : memref<9x4x128xbf16, #tpu.memory_space<vmem>>, vector<1x4x128xbf16>
    %43 = vector.shape_cast %42 : vector<1x4x128xbf16> to vector<4x128xbf16>
    %cst_31 = arith.constant dense<0.000000e+00> : vector<128x128xf32>
    %44 = tpu.matmul %39, %43, %cst_31 {dimension_numbers = #tpu.dot_dimension_numbers<[1], [0], [0], [1], [0, 0, 1, 1], [], []>} : vector<128x4xbf16>, vector<4x128xbf16>, vector<128x128xf32> -> vector<128x128xf32>
    %45 = arith.addf %36, %44 : vector<128x128xf32>
    %c0_32 = arith.constant 0 : index
    %c1_33 = arith.constant 1 : index
    %c2_34 = arith.constant 2 : index
    %c0_35 = arith.constant 0 : index
    %46 = vector.load %arg2[%c0_32, %c1_33, %c2_34, %c0_35] : memref<1x10x18x4xbf16, #tpu.memory_space<vmem>>, vector<1x8x16x4xbf16>
    %47 = vector.shape_cast %46 : vector<1x8x16x4xbf16> to vector<8x16x4xbf16>
    %48 = vector.shape_cast %47 : vector<8x16x4xbf16> to vector<128x4xbf16>
    %c5_i32 = arith.constant 5 : i32
    %49 = arith.addi %c5_i32, %arg1 : i32
    %50 = arith.index_cast %49 : i32 to index
    %c0_36 = arith.constant 0 : index
    %c0_37 = arith.constant 0 : index
    %51 = vector.load %arg3[%50, %c0_36, %c0_37] : memref<9x4x128xbf16, #tpu.memory_space<vmem>>, vector<1x4x128xbf16>
    %52 = vector.shape_cast %51 : vector<1x4x128xbf16> to vector<4x128xbf16>
    %cst_38 = arith.constant dense<0.000000e+00> : vector<128x128xf32>
    %53 = tpu.matmul %48, %52, %cst_38 {dimension_numbers = #tpu.dot_dimension_numbers<[1], [0], [0], [1], [0, 0, 1, 1], [], []>} : vector<128x4xbf16>, vector<4x128xbf16>, vector<128x128xf32> -> vector<128x128xf32>
    %54 = arith.addf %45, %53 : vector<128x128xf32>
    %c0_39 = arith.constant 0 : index
    %c2_40 = arith.constant 2 : index
    %c0_41 = arith.constant 0 : index
    %c0_42 = arith.constant 0 : index
    %55 = vector.load %arg2[%c0_39, %c2_40, %c0_41, %c0_42] : memref<1x10x18x4xbf16, #tpu.memory_space<vmem>>, vector<1x8x16x4xbf16>
    %56 = vector.shape_cast %55 : vector<1x8x16x4xbf16> to vector<8x16x4xbf16>
    %57 = vector.shape_cast %56 : vector<8x16x4xbf16> to vector<128x4xbf16>
    %c6_i32 = arith.constant 6 : i32
    %58 = arith.addi %c6_i32, %arg1 : i32
    %59 = arith.index_cast %58 : i32 to index
    %c0_43 = arith.constant 0 : index
    %c0_44 = arith.constant 0 : index
    %60 = vector.load %arg3[%59, %c0_43, %c0_44] : memref<9x4x128xbf16, #tpu.memory_space<vmem>>, vector<1x4x128xbf16>
    %61 = vector.shape_cast %60 : vector<1x4x128xbf16> to vector<4x128xbf16>
    %cst_45 = arith.constant dense<0.000000e+00> : vector<128x128xf32>
    %62 = tpu.matmul %57, %61, %cst_45 {dimension_numbers = #tpu.dot_dimension_numbers<[1], [0], [0], [1], [0, 0, 1, 1], [], []>} : vector<128x4xbf16>, vector<4x128xbf16>, vector<128x128xf32> -> vector<128x128xf32>
    %63 = arith.addf %54, %62 : vector<128x128xf32>
    %c0_46 = arith.constant 0 : index
    %c2_47 = arith.constant 2 : index
    %c1_48 = arith.constant 1 : index
    %c0_49 = arith.constant 0 : index
    %64 = vector.load %arg2[%c0_46, %c2_47, %c1_48, %c0_49] : memref<1x10x18x4xbf16, #tpu.memory_space<vmem>>, vector<1x8x16x4xbf16>
    %65 = vector.shape_cast %64 : vector<1x8x16x4xbf16> to vector<8x16x4xbf16>
    %66 = vector.shape_cast %65 : vector<8x16x4xbf16> to vector<128x4xbf16>
    %c7_i32 = arith.constant 7 : i32
    %67 = arith.addi %c7_i32, %arg1 : i32
    %68 = arith.index_cast %67 : i32 to index
    %c0_50 = arith.constant 0 : index
    %c0_51 = arith.constant 0 : index
    %69 = vector.load %arg3[%68, %c0_50, %c0_51] : memref<9x4x128xbf16, #tpu.memory_space<vmem>>, vector<1x4x128xbf16>
    %70 = vector.shape_cast %69 : vector<1x4x128xbf16> to vector<4x128xbf16>
    %cst_52 = arith.constant dense<0.000000e+00> : vector<128x128xf32>
    %71 = tpu.matmul %66, %70, %cst_52 {dimension_numbers = #tpu.dot_dimension_numbers<[1], [0], [0], [1], [0, 0, 1, 1], [], []>} : vector<128x4xbf16>, vector<4x128xbf16>, vector<128x128xf32> -> vector<128x128xf32>
    %72 = arith.addf %63, %71 : vector<128x128xf32>
    %c0_53 = arith.constant 0 : index
    %c2_54 = arith.constant 2 : index
    %c2_55 = arith.constant 2 : index
    %c0_56 = arith.constant 0 : index
    %73 = vector.load %arg2[%c0_53, %c2_54, %c2_55, %c0_56] : memref<1x10x18x4xbf16, #tpu.memory_space<vmem>>, vector<1x8x16x4xbf16>
    %74 = vector.shape_cast %73 : vector<1x8x16x4xbf16> to vector<8x16x4xbf16>
    %75 = vector.shape_cast %74 : vector<8x16x4xbf16> to vector<128x4xbf16>
    %c8_i32 = arith.constant 8 : i32
    %76 = arith.addi %c8_i32, %arg1 : i32
    %77 = arith.index_cast %76 : i32 to index
    %c0_57 = arith.constant 0 : index
    %c0_58 = arith.constant 0 : index
    %78 = vector.load %arg3[%77, %c0_57, %c0_58] : memref<9x4x128xbf16, #tpu.memory_space<vmem>>, vector<1x4x128xbf16>
    %79 = vector.shape_cast %78 : vector<1x4x128xbf16> to vector<4x128xbf16>
    %cst_59 = arith.constant dense<0.000000e+00> : vector<128x128xf32>
    %80 = tpu.matmul %75, %79, %cst_59 {dimension_numbers = #tpu.dot_dimension_numbers<[1], [0], [0], [1], [0, 0, 1, 1], [], []>} : vector<128x4xbf16>, vector<4x128xbf16>, vector<128x128xf32> -> vector<128x128xf32>
    %81 = arith.addf %72, %80 : vector<128x128xf32>
    %82 = vector.shape_cast %81 : vector<128x128xf32> to vector<8x16x128xf32>
    %c0_60 = arith.constant 0 : index
    %c0_61 = arith.constant 0 : index
    %c0_62 = arith.constant 0 : index
    %c0_63 = arith.constant 0 : index
    %83 = vector.load %arg4[%c0_60, %c0_61, %c0_62, %c0_63] : memref<1x8x16x128xf32, #tpu.memory_space<vmem>>, vector<1x8x16x128xf32>
    %84 = vector.shape_cast %83 : vector<1x8x16x128xf32> to vector<8x16x128xf32>
    %85 = vector.shape_cast %82 : vector<8x16x128xf32> to vector<1x8x16x128xf32>
    tpu.vector_store %arg4[%c0_60, %c0_61, %c0_62, %c0_63], %85 {strides = array<i32>} : memref<1x8x16x128xf32, #tpu.memory_space<vmem>>, vector<1x8x16x128xf32>,
    return
  }
  func.func @transform_0(%arg0: i32, %arg1: i32) -> (i32, i32, i32, i32) {
    %c0_i32 = arith.constant 0 : i32
    %c0_i32_0 = arith.constant 0 : i32
    %c0_i32_1 = arith.constant 0 : i32
    %c0_i32_2 = arith.constant 0 : i32
    return %arg0, %c0_i32, %c0_i32_0, %c0_i32_1 : i32, i32, i32, i32
  }
  func.func @transform_1(%arg0: i32, %arg1: i32) -> (i32, i32, i32) {
    %c0_i32 = arith.constant 0 : i32
    %c0_i32_0 = arith.constant 0 : i32
    %c0_i32_1 = arith.constant 0 : i32
    %c0_i32_2 = arith.constant 0 : i32
    return %c0_i32, %c0_i32_0, %c0_i32_1 : i32, i32, i32
  }
  func.func @transform_2(%arg0: i32, %arg1: i32) -> (i32, i32, i32, i32) {
    %c0_i32 = arith.constant 0 : i32
    %c0_i32_0 = arith.constant 0 : i32
    %c0_i32_1 = arith.constant 0 : i32
    return %arg0, %c0_i32, %c0_i32_0, %arg1 : i32, i32, i32, i32
  }
}

</mosaic_0001>

<bundles_post_ra>
// kernel: dirac_conv2d.1
= control target key start
LH: loop header
LB: loop body
LE: loop exit
PB: predicated region body
PF: predicated region fallthrough
CT: control target
= control target key end

     0   :  { %s3512_s9 = smov 0   ;;  %s3514_s10 = smov 0   ;;  %s4424_s0 = inlined_call_operand.vmem [shape: bf16[4,10,18,4], index: 0, kind: input, shape index: {}]   ;;  %s4425_s1 = inlined_call_operand.vmem [shape: bf16[9,4,128], index: 1, kind: input, shape index: {}]   ;;  %s4426_s2 = inlined_call_operand.vmem [shape: f32[4,8,16,128], index: 2, kind: output, shape index: {}]  }
   0x1   :  { %s3516_s11 = smov 0  }
   0x2 LB: > { %s24_s12 = sadd.s32 1, %s3491_s10  ;;  %p2761_p0 = scmp.ge.s32.totalorder %s3495_s11, 1  ;;  %s3495_s11 = sphi %s3516_s11, %s12_s11   ;;  %s3491_s10 = sphi %s3514_s10, %s4450_s10   ;;  %s3487_s9 = sphi %s3512_s9, %s4449_s9  }
   0x3   : > { %p26_p1 = scmp.ge.s32.totalorder %s24_s12, 4  ;;  %p126_p2 = scmp.lt.s32.totalorder %s3495_s11, 5 }
   0x5   : > { %s4452_s12 = smov (%p26_p1, %s24_s12), 0  ;;  %p127_p3 = pnand %p2761_p0, %p126_p2 }
   0x7   : > { %130 = sbr.rel (%p127_p3) target bundleno = 414 (0x19e), region = 28 }
   0xe   : > { %v2765_v0 = vld [vmem:[%s4425_s1 + $0x2] sm:$0x3]  ;;  %vm440_vm0 = vcmask 1041408   ;;  %v2880_v1 = vld [vmem:[%s4425_s1 + $0x8] sm:$0x3]  ;;  %p151_p4 = scmp.lt.s32.totalorder %s3487_s9, 3 }
   0xf   : > { %3413 = vmatprep.subr.msk.bf16.mxu1 %vm440_vm0, %v2765_v0  ;;  %3417 = vmatprep.subr.msk.bf16.mxu0 %vm440_vm0, %v2880_v1  ;;  %v442_v2 = vsel %vm440_vm0, %v2765_v0, 0  ;;  %v3540_v3 = vsel %vm440_vm0, %v2880_v1, 0  ;;  %v183_v4 = vld [vmem:[%s4425_s1] sm:$0x3]  ;;  %v2913_v5 = vld [vmem:[%s4425_s1 + $0xa] sm:$0x3] }
  0x10   : > { %3122 = vmatpush3.bf16.msra.mxu1 %v442_v2  ;;  %3194 = vmatpush3.bf16.msra.mxu0 %v3540_v3  ;;  %s4454_s9 = smov (!%p151_p4, %s3487_s9), 3  ;;  %vm192_vm1 = vsmask.f32 3328  ;;  %vm193_vm2 = vsmask.f32 7440  ;;  %vm415_vm3 = vcmask 31744  }
  0x11   : > { %3414 = vmatprep.subr.msk.bf16.mxu1 %vm440_vm0, %v183_v4  ;;  %3419 = vmatprep.subr.msk.bf16.mxu0 %vm440_vm0, %v2913_v5  ;;  %s3423_s21 = smul.u32 120, %s4454_s9  ;;  %v3581_v17 = vsel %vm440_vm0, %v183_v4, 0  ;;  %v3587_v26 = vld [vmem:[%s4425_s1 + $0xc] sm:$0x3]  ;;  %vm3596_vm4 = vmor %vm192_vm1, %vm193_vm2  ;;  %v3604_v37 = vsel %vm440_vm0, %v2913_v5, 0  ;;  %vm729_vm5 = vcmask 1042432  }
  0x12   : > { %v3608_v41 = vsel %vm440_vm0, %v3587_v26, 0  ;;  %vm730_vm6 = vcmask 1046532   ;;  %s3039_s13 = sshll.u32 %s4454_s9, 7 }
  0x13   : > { %s3557_s24 = scalar_lea.vmem %s4424_s0, %s3423_s21  ;;  %vm3751_vm7 = vmor %vm729_vm5, %vm730_vm6  ;;  %s4397_s16 = scalar_lea.vmem %s4426_s2, %s3039_s13 }
  0x14   : > { %v3560_v6 = vld [vmem:[%s3557_s24] sm:$0xf]  ;;  %v3563_v7 = vld [vmem:[%s3557_s24 + $0x4] sm:$0xf]  ;;  %v3566_v8 = vld [vmem:[%s3557_s24 + $0x8] sm:$0x1] }
  0x15   : > { %v196_v9 = vshrl.u32 %v3560_v6, 16  ;;  %v199_v10 = vshll.u32 %v3560_v6, 16  ;;  %v205_v11 = vshll.u32 %v3563_v7, 16  ;;  %v209_v12 = vshrl.u32 %v3563_v7, 16  ;;  %v2856_v13 = vld [vmem:[%s3557_s24 + $0xc] sm:$0xf] }
  0x16   : > { %v215_v14 = vshll.u32 %v3566_v8, 16  ;;  %v3575_v15 = vld [vmem:[%s3557_s24 + $0x10] sm:$0xf]  ;;  %v3578_v16 = vld [vmem:[%s3557_s24 + $0x14] sm:$0x1]  ;;  %v1182_v23 = vshrl.u32 %v2856_v13, 16 }
  0x17   : > { %v198_v18 = vrot.slane %v196_v9, 4  ;;  %v201_v19 = vrot.slane %v199_v10, 5  ;;  %v207_v20 = vrot.slane %v205_v11, 5  ;;  %v211_v21 = vrot.slane %v209_v12, 4  ;;  %v3592_v31 = vld [vmem:[%s3557_s24 + $0xc] sm:$0xf] }
  0x18   : > { %v217_v22 = vrot.slane %v215_v14, 5  ;;  %v1185_v24 = vshll.u32 %v2856_v13, 16  ;;  %v1191_v25 = vshll.u32 %v3575_v15, 16  ;;  %v1195_v29 = vshrl.u32 %v3575_v15, 16  ;;  %v3601_v36 = vld [vmem:[%s3557_s24 + $0x10] sm:$0xf] }
  0x19   : > { %v202_v27 = vor.u32 %v201_v19, %v198_v18  ;;  %v212_v28 = vor.u32 %v211_v21, %v207_v20  ;;  %v1201_v30 = vshll.u32 %v3578_v16, 16  ;;  %v1184_v33 = vrot.slane %v1182_v23, 4  ;;  %v3611_v44 = vld [vmem:[%s3557_s24 + $0x14] sm:$0x1]  ;;  %v2859_v55 = vld [vmem:[%s3557_s24 + $0x18] sm:$0xf] }
  0x1a   : > { %v1187_v34 = vrot.slane %v1185_v24, 5  ;;  %v1193_v35 = vrot.slane %v1191_v25, 5  ;;  %v1197_v40 = vrot.slane %v1195_v29, 4  ;;  %v220_v45 = vshrl.u32 %v3592_v31, 16  ;;  %v3624_v60 = vld [vmem:[%s3557_s24 + $0x1c] sm:$0xf] }
  0x1b   : > { %v203_v38 = vrot.slane %v202_v27, 4  ;;  %v213_v39 = vrot.slane %v212_v28, 4  ;;  %v1203_v43 = vrot.slane %v1201_v30, 5  ;;  %v223_v46 = vshll.u32 %v3592_v31, 16  ;;  %v3632_v1 = vld [vmem:[%s3557_s24 + $0x20] sm:$0x1] }
  0x1c   : > { %v1188_v42 = vor.u32 %v1187_v34, %v1184_v33  ;;  %v1198_v49 = vor.u32 %v1197_v40, %v1193_v35  ;;  %v229_v50 = vshll.u32 %v3601_v36, 16  ;;  %v222_v53 = vrot.slane %v220_v45, 4  ;;  %v3640_v21 = vld [vmem:[%s3557_s24 + $0x18] sm:$0xf]  ;;  %v3647_v27 = vld [vmem:[%s3557_s24 + $0x1c] sm:$0xf] }
  0x1d   : > { %v208_v47 = vsel %vm3596_vm4, %v203_v38, %v207_v20  ;;  %v218_v48 = vsel %vm3596_vm4, %v213_v39, %v217_v22  ;;  %v225_v54 = vrot.slane %v223_v46, 5  ;;  %v233_v58 = vshrl.u32 %v3601_v36, 16  ;;  %v3655_v38 = vld [vmem:[%s3557_s24 + $0x20] sm:$0x1] }
  0x1e   : > { %v2766_v51 = vcombine.low %v208_v47, %v218_v48  ;;  %v1189_v52 = vrot.slane %v1188_v42, 4  ;;  %v1199_v56 = vrot.slane %v1198_v49, 4  ;;  %v231_v57 = vrot.slane %v229_v50, 5  ;;  %v2862_v47 = vld [vmem:[%s3557_s24 + $0x24] sm:$0xf] }
  0x1f   : > { %v239_v59 = vshll.u32 %v3611_v44, 16  ;;  %v1575_v62 = vrot.slane %v3575_v15, 5  ;;  %v1578_v63 = vrot.slane %v3578_v16, 5  ;;  %v226_v0 = vor.u32 %v225_v54, %v222_v53 }
  0x20   : > { %3123 = vmatprep.mubr.msk.bf16.mxu1 %vm415_vm3, %v2766_v51  ;;  %v1194_v61 = vsel %vm3596_vm4, %v1189_v52, %v1193_v35  ;;  %v1204_v2 = vsel %vm3596_vm4, %v1199_v56, %v1203_v43  ;;  %v235_v4 = vrot.slane %v233_v58, 4  ;;  %v1206_v9 = vshrl.u32 %v2859_v55, 16  ;;  %v3665_v52 = vld [vmem:[%s3557_s24 + $0x28] sm:$0xf] }
  0x21   : > { %v241_v5 = vrot.slane %v239_v59, 5  ;;  %v2881_v10 = vcombine.low %v1194_v61, %v1204_v2  ;;  %v227_v11 = vrot.slane %v226_v0, 4  ;;  %v1209_v12 = vshll.u32 %v2859_v55, 16  ;;  %v3677_v61 = vld [vmem:[%s3557_s24 + $0x2c] sm:$0x1] }
  0x22   : > { %v1215_v13 = vshll.u32 %v3624_v60, 16  ;;  %v236_v14 = vor.u32 %v235_v4, %v231_v57  ;;  %v1208_v18 = vrot.slane %v1206_v9, 4  ;;  %v1219_v19 = vshrl.u32 %v3624_v60, 16 }
  0x23   : > { %v1225_v20 = vshll.u32 %v3632_v1, 16  ;;  %3195 = vmatprep.mubr.msk.bf16.mxu0 %vm415_vm3, %v2881_v10  ;;  %v232_v22 = vsel %vm3596_vm4, %v227_v11, %v231_v57  ;;  %v1211_v23 = vrot.slane %v1209_v12, 5  ;;  %v1582_v25 = vrot.slane %v3624_v60, 5  ;;  %v3671_v57 = vld [vmem:[%s4425_s1 + $0x4] sm:$0x3] }
  0x24   : > { %v1217_v24 = vrot.slane %v1215_v13, 5  ;;  %v237_v28 = vrot.slane %v236_v14, 4  ;;  %v1221_v29 = vrot.slane %v1219_v19, 4  ;;  %v1585_v33 = vrot.slane %v3632_v1, 5  ;;  %v3684_v11 = vld [vmem:[%s3557_s24 + $0x24] sm:$0xf] }
  0x25   : > { %v1227_v30 = vrot.slane %v1225_v20, 5  ;;  %v1212_v34 = vor.u32 %v1211_v23, %v1208_v18  ;;  %v3652_v35 = vrot.slane %v1582_v25, 4  ;;  %v244_v39 = vshrl.u32 %v3640_v21, 16  ;;  %v3687_v19 = vld [vmem:[%s3557_s24 + $0x28] sm:$0xf] }
  0x26   : > { %v247_v40 = vshll.u32 %v3640_v21, 16  ;;  %v242_v42 = vsel %vm3596_vm4, %v237_v28, %v241_v5  ;;  %v1222_v43 = vor.u32 %v1221_v29, %v1217_v24  ;;  %v253_v45 = vshll.u32 %v3647_v27, 16  ;;  %v3697_v29 = vld [vmem:[%s3557_s24 + $0x2c] sm:$0x1] }
  0x27   : > { %v257_v46 = vshrl.u32 %v3647_v27, 16  ;;  %v2767_v48 = vcombine.low %v232_v22, %v242_v42  ;;  %v1213_v49 = vrot.slane %v1212_v34, 4  ;;  %v246_v50 = vrot.slane %v244_v39, 4 }
  0x28   : > { %v249_v51 = vrot.slane %v247_v40, 5  ;;  %v1223_v53 = vrot.slane %v1222_v43, 4  ;;  %v255_v54 = vrot.slane %v253_v45, 5  ;;  %v263_v56 = vshll.u32 %v3655_v38, 16  ;;  %v2865_v45 = vld [vmem:[%s3557_s24 + $0x30] sm:$0xf] }
  0x29   : > { %v259_v55 = vrot.slane %v257_v46, 4  ;;  %3124 = vmatmul.mubr.msk.bf16.vlgmr.msra.gmra.mrb[0].mxu1 %vm415_vm3, %v2767_v48  ;;  %v1218_v58 = vsel %vm3596_vm4, %v1213_v49, %v1217_v24  ;;  %v1230_v0 = vshrl.u32 %v2862_v47, 16  ;;  %v1233_v2 = vshll.u32 %v2862_v47, 16 }
  0x2a   : > { %v250_v59 = vor.u32 %v249_v51, %v246_v50  ;;  %3140 = vmatpush3.bf16.msra.mxu1 %v3581_v17  ;;  %v1228_v4 = vsel %vm3596_vm4, %v1223_v53, %v1227_v30  ;;  %v265_v9 = vrot.slane %v263_v56, 5  ;;  %v1239_v10 = vshll.u32 %v3665_v52, 16  ;;  %v3707_v50 = vld [vmem:[%s3557_s24 + $0x34] sm:$0xf] }
  0x2b   : > { %v260_v5 = vor.u32 %v259_v55, %v255_v54  ;;  %v2882_v12 = vcombine.low %v1218_v58, %v1228_v4  ;;  %v1232_v14 = vrot.slane %v1230_v0, 4  ;;  %v1235_v18 = vrot.slane %v1233_v2, 5  ;;  %3415 = vmatprep.subr.msk.bf16.mxu1 %vm440_vm0, %v3671_v57  ;;  %v3717_v58 = vld [vmem:[%s3557_s24 + $0x38] sm:$0x1] }
  0x2c   : > { %v251_v13 = vrot.slane %v250_v59, 4  ;;  %v1241_v20 = vrot.slane %v1239_v10, 5  ;;  %v1243_v22 = vshrl.u32 %v3665_v52, 16  ;;  %v1249_v23 = vshll.u32 %v3677_v61, 16 }
  0x2d   : > { %v261_v17 = vrot.slane %v260_v5, 4  ;;  %3196 = vmatmul.mubr.msk.bf16.vlgmr.msra.gmra.mrb[0].mxu0 %vm415_vm3, %v2882_v12  ;;  %v1236_v28 = vor.u32 %v1235_v18, %v1232_v14  ;;  %v268_v30 = vshrl.u32 %v3684_v11, 16  ;;  %v271_v34 = vshll.u32 %v3684_v11, 16  ;;  %v3722_v14 = vld [vmem:[%s3557_s24 + $0x30] sm:$0xf] }
  0x2e   : > { %v256_v24 = vsel %vm3596_vm4, %v251_v13, %v255_v54  ;;  %3212 = vmatpush3.bf16.msra.mxu0 %v3604_v37  ;;  %v1245_v40 = vrot.slane %v1243_v22, 4  ;;  %v1251_v42 = vrot.slane %v1249_v23, 5  ;;  %v277_v43 = vshll.u32 %v3687_v19, 16  ;;  %v3728_v23 = vld [vmem:[%s3557_s24 + $0x34] sm:$0xf] }
  0x2f   : > { %v266_v39 = vsel %vm3596_vm4, %v261_v17, %v265_v9  ;;  %v1237_v47 = vrot.slane %v1236_v28, 4  ;;  %v270_v48 = vrot.slane %v268_v30, 4  ;;  %v273_v49 = vrot.slane %v271_v34, 5  ;;  %3420 = vmatprep.subr.msk.bf16.mxu0 %vm440_vm0, %v3587_v26 }
  0x30   : > { %v2768_v46 = vcombine.low %v256_v24, %v266_v39  ;;  %v1246_v37 = vor.u32 %v1245_v40, %v1241_v20  ;;  %v279_v51 = vrot.slane %v277_v43, 5  ;;  %v281_v53 = vshrl.u32 %v3687_v19, 16  ;;  %v3733_v39 = vld [vmem:[%s3557_s24 + $0x38] sm:$0x1] }
  0x31   : > { %v287_v54 = vshll.u32 %v3697_v29, 16  ;;  %v1242_v55 = vsel %vm3596_vm4, %v1237_v47, %v1241_v20  ;;  %v274_v56 = vor.u32 %v273_v49, %v270_v48  ;;  %v1254_v59 = vshrl.u32 %v2865_v45, 16 }
  0x32   : > { %3127 = vmatprep.mubr.msk.bf16.mxu1 %vm415_vm3, %v2768_v46  ;;  %v1257_v0 = vshll.u32 %v2865_v45, 16  ;;  %v1247_v2 = vrot.slane %v1246_v37, 4  ;;  %v283_v26 = vrot.slane %v281_v53, 4  ;;  %v1263_v5 = vshll.u32 %v3707_v50, 16  ;;  %v2897_v37 = vld [vmem:[%s3557_s24 + $0xc] sm:$0xe] }
  0x33   : > { %v289_v4 = vrot.slane %v287_v54, 5  ;;  %v275_v9 = vrot.slane %v274_v56, 4  ;;  %v1256_v10 = vrot.slane %v1254_v59, 4  ;;  %v1267_v13 = vshrl.u32 %v3707_v50, 16  ;;  %v3745_v56 = vld [vmem:[%s3557_s24 + $0x3c] sm:$0xf] }
  0x34   : > { %v1259_v12 = vrot.slane %v1257_v0, 5  ;;  %v1252_v18 = vsel %vm3596_vm4, %v1247_v2, %v1251_v42  ;;  %v284_v17 = vor.u32 %v283_v26, %v279_v51  ;;  %v1265_v20 = vrot.slane %v1263_v5, 5 }
  0x35   : > { %v1273_v22 = vshll.u32 %v3717_v58, 16  ;;  %v2883_v24 = vcombine.low %v1242_v55, %v1252_v18  ;;  %v280_v28 = vsel %vm3596_vm4, %v275_v9, %v279_v51  ;;  %v1269_v34 = vrot.slane %v1267_v13, 4  ;;  %v3759_v18 = vld [vmem:[%s3557_s24 + $0x44] sm:$0x1] }
  0x36   : > { %v1260_v30 = vor.u32 %v1259_v12, %v1256_v10  ;;  %v285_v40 = vrot.slane %v284_v17, 4  ;;  %v292_v42 = vshrl.u32 %v3722_v14, 16  ;;  %v295_v45 = vshll.u32 %v3722_v14, 16  ;;  %v2898_v17 = vld [vmem:[%s3557_s24 + $0x18] sm:$0xe] }
  0x37   : > { %v1275_v43 = vrot.slane %v1273_v22, 5  ;;  %3199 = vmatprep.mubr.msk.bf16.mxu0 %vm415_vm3, %v2883_v24  ;;  %v1270_v47 = vor.u32 %v1269_v34, %v1265_v20  ;;  %v301_v48 = vshll.u32 %v3728_v23, 16  ;;  %v305_v49 = vshrl.u32 %v3728_v23, 16 }
  0x38   : > { %v1261_v46 = vrot.slane %v1260_v30, 4  ;;  %v290_v51 = vsel %vm3596_vm4, %v285_v40, %v289_v4  ;;  %v294_v53 = vrot.slane %v292_v42, 4  ;;  %v297_v54 = vrot.slane %v295_v45, 5  ;;  %v3756_v4 = vld [vmem:[%s3557_s24 + $0x40] sm:$0xf] }
  0x39   : > { %v311_v55 = vshll.u32 %v3733_v39, 16  ;;  %v2769_v59 = vcombine.low %v280_v28, %v290_v51  ;;  %v1271_v2 = vrot.slane %v1270_v47, 4  ;;  %v303_v26 = vrot.slane %v301_v48, 5  ;;  %v3770_v30 = vld [vmem:[%s3557_s24 + $0x48] sm:$0xf] }
  0x3a   : > { %v1266_v0 = vsel %vm3596_vm4, %v1261_v46, %v1265_v20  ;;  %v298_v9 = vor.u32 %v297_v54, %v294_v53  ;;  %v307_v10 = vrot.slane %v305_v49, 4  ;;  %v2905_v13 = vrot.slane %v2897_v37, 9 }
  0x3b   : > { %v313_v12 = vrot.slane %v311_v55, 5  ;;  %3128 = vmatmul.mubr.msk.bf16.gmra.mrb[4].mxu1 %vm415_vm3, %v2769_v59  ;;  %v1276_v20 = vsel %vm3596_vm4, %v1271_v2, %v1275_v43  ;;  %v1577_v22 = vrot.slane %v1575_v62, 4  ;;  %v316_v24 = vshrl.u32 %v3745_v56, 16  ;;  %v3790_v55 = vld [vmem:[%s3557_s24 + $0x50] sm:$0x1] }
  0x3c   : > { %v319_v28 = vshll.u32 %v3745_v56, 16  ;;  %v2884_v34 = vcombine.low %v1266_v0, %v1276_v20  ;;  %v299_v40 = vrot.slane %v298_v9, 4  ;;  %v308_v42 = vor.u32 %v307_v10, %v303_v26 }
  0x3d   : > { %v1576_v45 = vsel %vm3751_vm7, %v2905_v13, %v1575_v62  ;;  %v1579_v43 = vsel %vm3751_vm7, %v1577_v22, %v1578_v63  ;;  %v318_v46 = vrot.slane %v316_v24, 4  ;;  %v325_v48 = vshll.u32 %v3756_v4, 16  ;;  %v3786_v62 = vld [vmem:[%s3557_s24 + $0x4c] sm:$0xf] }
  0x3e   : > { %v321_v47 = vrot.slane %v319_v28, 5  ;;  %3200 = vmatmul.mubr.msk.bf16.gmra.mrb[4].mxu0 %vm415_vm3, %v2884_v34  ;;  %v304_v49 = vsel %vm3596_vm4, %v299_v40, %v303_v26  ;;  %v309_v37 = vrot.slane %v308_v42, 4  ;;  %v2914_v15 = vcombine.low %v1576_v45, %v1579_v43  ;;  %v3808_v28 = vld [vmem:[%s3557_s24 + $0x54] sm:$0xf]  ;;  %v3819_v34 = vld [vmem:[%s4425_s1 + $0xe] sm:$0x3] }
  0x3f   : > { %v329_v51 = vshrl.u32 %v3756_v4, 16  ;;  %v327_v53 = vrot.slane %v325_v48, 5  ;;  %v335_v63 = vshll.u32 %v3759_v18, 16  ;;  %v2906_v54 = vrot.slane %v2898_v17, 9 }
  0x40   : > { %v322_v16 = vor.u32 %v321_v47, %v318_v46  ;;  %v314_v59 = vsel %vm3596_vm4, %v309_v37, %v313_v12  ;;  %3213 = vmatprep.mubr.msk.bf16.mxu0 %vm415_vm3, %v2914_v15  ;;  %v1586_v2 = vsel %vm3751_vm7, %v3652_v35, %v1585_v33  ;;  %v340_v26 = vshrl.u32 %v3770_v30, 16  ;;  %v2899_v12 = vld [vmem:[%s3557_s24 + $0x24] sm:$0xe]  ;;  %v3824_v37 = vld [vmem:[%s3557_s24 + $0x58] sm:$0xf] }
  0x41   : > { %v331_v0 = vrot.slane %v329_v51, 4  ;;  %v2770_v9 = vcombine.low %v304_v49, %v314_v59  ;;  %v337_v13 = vrot.slane %v335_v63, 5  ;;  %v1583_v17 = vsel %vm3751_vm7, %v2906_v54, %v1582_v25  ;;  %v3833_v54 = vld [vmem:[%s3557_s24 + $0x5c] sm:$0x1] }
  0x42   : > { %v323_v10 = vrot.slane %v322_v16, 4  ;;  %v2915_v22 = vcombine.low %v1583_v17, %v1586_v2  ;;  %v342_v24 = vrot.slane %v340_v26, 4  ;;  %v343_v1 = vshll.u32 %v3770_v30, 16 }
  0x43   : > { %v332_v20 = vor.u32 %v331_v0, %v327_v53  ;;  %3131 = vmatprep.mubr.msk.bf16.mxu1 %vm415_vm3, %v2770_v9  ;;  %v349_v35 = vshll.u32 %v3786_v62, 16  ;;  %v353_v60 = vshrl.u32 %v3786_v62, 16  ;;  %v359_v25 = vshll.u32 %v3790_v55, 16 }
  0x44   : > { %v328_v33 = vsel %vm3596_vm4, %v323_v10, %v327_v53  ;;  %v345_v42 = vrot.slane %v343_v1, 5  ;;  %v2907_v45 = vrot.slane %v2899_v12, 9  ;;  %v1589_v43 = vrot.slane %v3665_v52, 5  ;;  %v2900_v10 = vld [vmem:[%s3557_s24 + $0x30] sm:$0xe] }
  0x45   : > { %v333_v40 = vrot.slane %v332_v20, 4  ;;  %v351_v46 = vrot.slane %v349_v35, 5  ;;  %v355_v47 = vrot.slane %v353_v60, 4  ;;  %v361_v48 = vrot.slane %v359_v25, 5 }
  0x46   : > { %v1592_v49 = vrot.slane %v3677_v61, 5  ;;  %3214 = vmatmul.mubr.msk.bf16.vlgmr.msra.gmra.mrb[0].mxu0 %vm415_vm3, %v2915_v22  ;;  %v346_v51 = vor.u32 %v345_v42, %v342_v24  ;;  %v1590_v16 = vsel %vm3751_vm7, %v2907_v45, %v1589_v43  ;;  %v1591_v53 = vrot.slane %v1589_v43, 4  ;;  %v3854_v42 = vld [vmem:[%s3557_s24 + $0x40] sm:$0xf]  ;;  %v3857_v45 = vld [vmem:[%s3557_s24 + $0x44] sm:$0x1] }
  0x47   : > { %v338_v15 = vsel %vm3596_vm4, %v333_v40, %v337_v13  ;;  %3230 = vmatpush3.bf16.msra.mxu0 %v3608_v41  ;;  %v356_v52 = vor.u32 %v355_v47, %v351_v46  ;;  %v364_v61 = vshrl.u32 %v3808_v28, 16  ;;  %v367_v59 = vshll.u32 %v3808_v28, 16 }
  0x48   : > { %v2771_v63 = vcombine.low %v328_v33, %v338_v15  ;;  %v347_v0 = vrot.slane %v346_v51, 4  ;;  %v1593_v2 = vsel %vm3751_vm7, %v1591_v53, %v1592_v49  ;;  %v373_v26 = vshll.u32 %v3824_v37, 16  ;;  %3421 = vmatprep.subr.msk.bf16.mxu0 %vm440_vm0, %v3819_v34  ;;  %v2901_v33 = vld [vmem:[%s3557_s24 + $0x3c] sm:$0xe] }
  0x49   : > { %v377_v9 = vshrl.u32 %v3824_v37, 16  ;;  %v357_v41 = vrot.slane %v356_v52, 4  ;;  %v2916_v13 = vcombine.low %v1590_v16, %v1593_v2  ;;  %v366_v17 = vrot.slane %v364_v61, 4  ;;  %v2902_v2 = vld [vmem:[%s3557_s24 + $0x48] sm:$0xe] }
  0x4a   : > { %3132 = vmatmul.mubr.msk.bf16.gmra.mrb[8].mxu1 %vm415_vm3, %v2771_v63  ;;  %v369_v12 = vrot.slane %v367_v59, 5  ;;  %v352_v20 = vsel %vm3596_vm4, %v347_v0, %v351_v46  ;;  %v375_v22 = vrot.slane %v373_v26, 5  ;;  %v383_v1 = vshll.u32 %v3833_v54, 16  ;;  %v3872_v59 = vld [vmem:[%s3557_s24 + $0x4c] sm:$0xf] }
  0x4b   : > { %v379_v24 = vrot.slane %v377_v9, 4  ;;  %v362_v35 = vsel %vm3596_vm4, %v357_v41, %v361_v48  ;;  %3217 = vmatprep.mubr.msk.bf16.mxu0 %vm415_vm3, %v2916_v13  ;;  %v2908_v25 = vrot.slane %v2900_v10, 9  ;;  %v1596_v40 = vrot.slane %v3707_v50, 5  ;;  %v3875_v0 = vld [vmem:[%s3557_s24 + $0x50] sm:$0x1] }
  0x4c   : > { %v370_v60 = vor.u32 %v369_v12, %v366_v17  ;;  %v2772_v43 = vcombine.low %v352_v20, %v362_v35  ;;  %v385_v47 = vrot.slane %v383_v1, 5  ;;  %v1599_v49 = vrot.slane %v3717_v58, 5  ;;  %v3883_v17 = vld [vmem:[%s3557_s24 + $0x58] sm:$0xf]  ;;  %v3886_v12 = vld [vmem:[%s3557_s24 + $0x5c] sm:$0x1] }
  0x4d   : > { %v380_v46 = vor.u32 %v379_v24, %v375_v22  ;;  %v1597_v48 = vsel %vm3751_vm7, %v2908_v25, %v1596_v40  ;;  %v1598_v51 = vrot.slane %v1596_v40, 4  ;;  %v2909_v16 = vrot.slane %v2901_v33, 9  ;;  %4436 = vst [vmem:[#allocation2_spill] sm:$0xff] %v3886_v12  ;;  %v3896_v35 = vld [vmem:[%s3557_s24 + $0x64] sm:$0xf] }
  0x4e   : > { %v371_v15 = vrot.slane %v370_v60, 4  ;;  %3135 = vmatprep.mubr.msk.bf16.mxu1 %vm415_vm3, %v2772_v43  ;;  %v1603_v53 = vrot.slane %v3854_v42, 5  ;;  %v1606_v63 = vrot.slane %v3857_v45, 5  ;;  %v2782_v61 = vcombine.low %v3560_v6, %v3563_v7  ;;  %v2903_v6 = vld [vmem:[%s3557_s24 + $0x54] sm:$0xe]  ;;  %4437 = vst [vmem:[#allocation3_spill] sm:$0xff] %v3896_v35 }
  0x4f   : > { %v381_v50 = vrot.slane %v380_v46, 4  ;;  %v1600_v58 = vsel %vm3751_vm7, %v1598_v51, %v1599_v49  ;;  %v1610_v24 = vrot.slane %v3872_v59, 5  ;;  %v1613_v1 = vrot.slane %v3875_v0, 5  ;;  %v3899_v60 = vld [vmem:[%s3557_s24 + $0x68] sm:$0x1] }
  0x50   : > { %v376_v52 = vsel %vm3596_vm4, %v371_v15, %v375_v22  ;;  %v2917_v9 = vcombine.low %v1597_v48, %v1600_v58  ;;  %v1604_v10 = vsel %vm3751_vm7, %v2909_v16, %v1603_v53  ;;  %v1605_v41 = vrot.slane %v1603_v53, 4  ;;  %4438 = vst [vmem:[#allocation4_spill] sm:$0xff] %v3899_v60 }
  0x51   : > { %v386_v26 = vsel %vm3596_vm4, %v381_v50, %v385_v47  ;;  %v2910_v22 = vrot.slane %v2902_v2, 9  ;;  %v1612_v40 = vrot.slane %v1610_v24, 4  ;;  %v2911_v43 = vrot.slane %v2903_v6, 9  ;;  %v2904_v47 = vld [vmem:[%s3557_s24 + $0x60] sm:$0xe] }
  0x52   : > { %v2773_v13 = vcombine.low %v376_v52, %v386_v26  ;;  %3218 = vmatmul.mubr.msk.bf16.gmra.mrb[4].mxu0 %vm415_vm3, %v2917_v9  ;;  %v1607_v20 = vsel %vm3751_vm7, %v1605_v41, %v1606_v63  ;;  %v1617_v46 = vrot.slane %v3883_v17, 5  ;;  %v741_v49 = vrot.slane %v3601_v36, 5  ;;  %v707_v2 = vld [vmem:[%s3557_s24 + $0x18] sm:$0xe]  ;;  %v3931_v6 = vld [vmem:[%s4425_s1 + $0x6] sm:$0x3] }
  0x53   : > { %v2918_v33 = vcombine.low %v1604_v10, %v1607_v20  ;;  %v1611_v25 = vsel %vm3751_vm7, %v2910_v22, %v1610_v24  ;;  %v1620_v15 = vrot.slane %v3886_v12, 5  ;;  %v1614_v48 = vsel %vm3751_vm7, %v1612_v40, %v1613_v1  ;;  %v709_v1 = vld [vmem:[%s3557_s24 + $0x30] sm:$0xe] }
  0x54   : > { %3136 = vmatmul.mubr.msk.bf16.gmra.mrb[12].mxu1 %vm415_vm3, %v2773_v13  ;;  %v1618_v51 = vsel %vm3751_vm7, %v2911_v43, %v1617_v46  ;;  %v1619_v16 = vrot.slane %v1617_v46, 4  ;;  %v1624_v50 = vrot.slane %v3896_v35, 5  ;;  %v2783_v53 = vcombine.low %v3592_v31, %v3601_v36  ;;  %v708_v36 = vld [vmem:[%s3557_s24 + $0x24] sm:$0xe]  ;;  %v4205_v12 = vld [vmem:[%s3557_s24 + $0x70] sm:$0xf] }
  0x55   : > { %3141 = vmatprep.mubr.msk.bf16.mxu1 %vm415_vm3, %v2782_v61  ;;  %3221 = vmatprep.mubr.msk.bf16.mxu0 %vm415_vm3, %v2918_v33  ;;  %v2919_v63 = vcombine.low %v1611_v25, %v1614_v48  ;;  %v2912_v52 = vrot.slane %v2904_v47, 9  ;;  %v1627_v58 = vrot.slane %v3899_v60, 5  ;;  %v706_v61 = vld [vmem:[%s3557_s24 + $0xc] sm:$0xe]  ;;  %v744_v26 = vrot.slane %v3611_v44, 5 }
  0x56   : > { %v2784_v9 = vcombine.low %v3640_v21, %v3647_v27  ;;  %v1621_v10 = vsel %vm3751_vm7, %v1619_v16, %v1620_v15  ;;  %v1626_v41 = vrot.slane %v1624_v50, 4  ;;  %v841_v13 = vsel %vm440_vm0, %v3671_v57, 0  ;;  %v3453_v16 = vld [vmem:[%s3557_s24 + $0x18] sm:$0xff]   ;;  %v4177_v60 = vld [vmem:[%s3557_s24 + $0x64] sm:$0xf] }
  0x57   : > { %v2920_v31 = vcombine.low %v1618_v51, %v1621_v10  ;;  %v2799_v44 = vrot.slane %v706_v61, 9  ;;  %v743_v20 = vrot.slane %v741_v49, 4  ;;  %v2800_v21 = vrot.slane %v707_v2, 9  ;;  %4439 = vst [vmem:[#allocation5_spill] sm:$0xff] %v4177_v60 }
  0x58   : > { %v1625_v22 = vsel %vm3751_vm7, %v2912_v52, %v1624_v50  ;;  %v1628_v57 = vsel %vm3751_vm7, %v1626_v41, %v1627_v58  ;;  %v748_v24 = vrot.slane %v3647_v27, 5  ;;  %v751_v40 = vrot.slane %v3655_v38, 5 }
  0x59   : > { %v3944_v33 = vsel %vm3751_vm7, %v2799_v44, %v741_v49  ;;  %v3948_v25 = vsel %vm3751_vm7, %v743_v20, %v744_v26  ;;  %v2801_v43 = vrot.slane %v708_v36, 9  ;;  %v2921_v49 = vcombine.low %v1625_v22, %v1628_v57  ;;  %v2963_v26 = vld [vmem:[%s3557_s24 + $0x18] sm:$0xf]  ;;  %v3455_v57 = vld [vmem:[%s3557_s24 + $0x24] sm:$0xff]  }
  0x5a   : > { %3222 = vmatmul.mubr.msk.bf16.gmra.mrb[8].mxu0 %vm415_vm3, %v2919_v63  ;;  %v2808_v27 = vcombine.low %v3944_v33, %v3948_v25  ;;  %v3957_v46 = vsel %vm3751_vm7, %v2800_v21, %v748_v24  ;;  %v750_v47 = vrot.slane %v748_v24, 4  ;;  %v755_v15 = vrot.slane %v3687_v19, 5 }
  0x5b   : > { %3225 = vmatprep.mubr.msk.bf16.mxu0 %vm415_vm3, %v2920_v31  ;;  %v758_v48 = vrot.slane %v3697_v29, 5  ;;  %v2802_v38 = vrot.slane %v709_v1, 9  ;;  %v2785_v51 = vcombine.low %v3684_v11, %v3687_v19  ;;  %v765_v63 = vrot.slane %v3733_v39, 5  ;;  %v710_v19 = vld [vmem:[%s3557_s24 + $0x3c] sm:$0xe] }
  0x5c   : > { %3142 = vmatmul.mubr.msk.bf16.vlgmr.msra.gmra.mrb[0].mxu1 %vm415_vm3, %v2783_v53  ;;  %v3966_v50 = vsel %vm3751_vm7, %v750_v47, %v751_v40  ;;  %v762_v53 = vrot.slane %v3728_v23, 5  ;;  %v2786_v52 = vcombine.low %v3722_v14, %v3728_v23  ;;  %v3976_v58 = vsel %vm3751_vm7, %v2801_v43, %v755_v15  ;;  %v705_v14 = vld [vmem:[%s3557_s24] sm:$0xe]  ;;  %v4004_v31 = vld [vmem:[%s3557_s24 + $0x1c] sm:$0xf] }
  0x5d   : > { %3158 = vmatpush3.bf16.msra.mxu1 %v841_v13  ;;  %3145 = vmatprep.mubr.msk.bf16.mxu1 %vm415_vm3, %v2784_v9  ;;  %v2809_v29 = vcombine.low %v3957_v46, %v3966_v50  ;;  %v757_v11 = vrot.slane %v755_v15, 4  ;;  %v734_v61 = vrot.slane %v3563_v7, 5  ;;  %v2803_v10 = vrot.slane %v710_v19, 9  ;;  %v711_v1 = vld [vmem:[%s3557_s24 + $0x48] sm:$0xe] }
  0x5e   : > { %3416 = vmatprep.subr.msk.bf16.mxu1 %vm440_vm0, %v3931_v6  ;;  %v3982_v2 = vsel %vm3751_vm7, %v2802_v38, %v762_v53  ;;  %v764_v39 = vrot.slane %v762_v53, 4  ;;  %v737_v41 = vrot.slane %v3566_v8, 5  ;;  %v2798_v36 = vrot.slane %v705_v14, 9  ;;  %v4030_v38 = vld [vmem:[%s4425_s1 + $0x10] sm:$0x3] }
  0x5f   : > { %v3988_v23 = vsel %vm3751_vm7, %v757_v11, %v758_v48  ;;  %v736_v44 = vrot.slane %v734_v61, 4  ;;  %v769_v20 = vrot.slane %v3756_v4, 5  ;;  %v772_v21 = vrot.slane %v3759_v18, 5  ;;  %v4051_v14 = vld [vmem:[%s3557_s24 + $0x28] sm:$0xf] }
  0x60   : > { %v3997_v9 = vsel %vm3751_vm7, %v764_v39, %v765_v63  ;;  %v2787_v22 = vcombine.low %v3745_v56, %v3756_v4  ;;  %v2023_v24 = vshrl.u32 %v2963_v26, 16  ;;  %v2026_v8 = vshll.u32 %v2963_v26, 16  ;;  %v3457_v4 = vld [vmem:[%s3557_s24 + $0x30] sm:$0xff]   ;;  %v4153_v46 = vld [vmem:[%s3557_s24 + $0x44] sm:$0x1] }
  0x61   : > { %v2032_v40 = vshll.u32 %v4004_v31, 16  ;;  %v2036_v43 = vshrl.u32 %v4004_v31, 16  ;;  %v4016_v47 = vsel %vm3751_vm7, %v2803_v10, %v769_v20  ;;  %v2267_v18 = vsel %vm440_vm0, %v3819_v34, 0  ;;  %v2981_v7 = vld [vmem:[%s3557_s24 + $0x60] sm:$0xf] }
  0x62   : > { %3226 = vmatmul.mubr.msk.bf16.gmra.mrb[12].mxu0 %vm415_vm3, %v2921_v49  ;;  %v771_v49 = vrot.slane %v769_v20, 4  ;;  %v2788_v56 = vcombine.low %v3770_v30, %v3786_v62  ;;  %v735_v15 = vsel %vm3751_vm7, %v2798_v36, %v734_v61  ;;  %v738_v48 = vsel %vm3751_vm7, %v736_v44, %v737_v41  ;;  %v4038_v30 = vld [vmem:[%s3557_s24 + $0x20] sm:$0x1]  ;;  %v2966_v61 = vld [vmem:[%s3557_s24 + $0x24] sm:$0xf] }
  0x63   : > { %3231 = vmatprep.mubr.msk.bf16.mxu0 %vm415_vm3, %v3453_v16  ;;  %v2804_v34 = vrot.slane %v711_v1, 9  ;;  %v2025_v16 = vrot.slane %v2023_v24, 4  ;;  %v2028_v53 = vrot.slane %v2026_v8, 5  ;;  %v4044_v11 = vrot.slane %v2032_v40, 5  ;;  %v712_v44 = vld [vmem:[%s3557_s24 + $0x54] sm:$0xe] }
  0x64   : > { %3146 = vmatmul.mubr.msk.bf16.gmra.mrb[4].mxu1 %vm415_vm3, %v2785_v51  ;;  %v4034_v51 = vsel %vm3751_vm7, %v771_v49, %v772_v21  ;;  %v2038_v19 = vrot.slane %v2036_v43, 4  ;;  %v779_v39 = vrot.slane %v3790_v55, 5  ;;  %v2789_v10 = vcombine.low %v3808_v28, %v3824_v37  ;;  %v2969_v55 = vld [vmem:[%s3557_s24 + $0x30] sm:$0xf]  ;;  %v3459_v20 = vld [vmem:[%s3557_s24 + $0x3c] sm:$0xff]   ;;  %v3460_v1 = vld [vmem:[%s3557_s24 + $0x48] sm:$0xff]  }
  0x65   : > { %3149 = vmatprep.mubr.msk.bf16.mxu1 %vm415_vm3, %v2786_v52  ;;  %v776_v52 = vrot.slane %v3786_v62, 5  ;;  %v2807_v41 = vcombine.low %v735_v15, %v738_v48  ;;  %v2042_v36 = vshll.u32 %v4038_v30, 16  ;;  %v2029_v21 = vor.u32 %v2028_v53, %v2025_v16  ;;  %v4070_v8 = vld [vmem:[%s3557_s24 + $0x34] sm:$0xf] }
  0x66   : > { %v2039_v28 = vor.u32 %v2038_v19, %v4044_v11  ;;  %v2056_v40 = vshll.u32 %v4051_v14, 16  ;;  %v2060_v43 = vshrl.u32 %v4051_v14, 16  ;;  %v783_v15 = vrot.slane %v3824_v37, 5 }
  0x67   : > { %v4055_v62 = vsel %vm3751_vm7, %v2804_v34, %v776_v52  ;;  %v778_v26 = vrot.slane %v776_v52, 4  ;;  %v2080_v48 = vshll.u32 %v4070_v8, 16  ;;  %v2084_v34 = vshrl.u32 %v4070_v8, 16 }
  0x68   : > { %v786_v16 = vrot.slane %v3833_v54, 5  ;;  %v2030_v53 = vrot.slane %v2029_v21, 4  ;;  %v2044_v52 = vrot.slane %v2042_v36, 5  ;;  %v2040_v37 = vrot.slane %v2039_v28, 4  ;;  %v4093_v36 = vld [vmem:[%s3557_s24 + $0x2c] sm:$0x1] }
  0x69   : > { %v4067_v24 = vsel %vm3751_vm7, %v778_v26, %v779_v39  ;;  %v4089_v26 = vrot.slane %v2056_v40, 5  ;;  %v4100_v21 = vld [vmem:[%s3557_s24 + $0x38] sm:$0x1]  ;;  %v1042_v28 = vsel %vm440_vm0, %v3931_v6, 0 }
  0x6a   : > { %3232 = vmatmul.mubr.msk.bf16.vlgmr.msra.gmra.mrb[0].mxu0 %vm415_vm3, %v3455_v57  ;;  %v2050_v57 = vshll.u32 %v2966_v61, 16  ;;  %v3461_v40 = vld [vmem:[%s3557_s24 + $0x54] sm:$0xff]  }
  0x6b   : > { %3248 = vmatpush3.bf16.msra.mxu0 %v2267_v18  ;;  %3235 = vmatprep.mubr.msk.bf16.mxu0 %vm415_vm3, %v3457_v4  ;;  %v2071_v18 = vshrl.u32 %v2969_v55, 16  ;;  %v2805_v4 = vrot.slane %v712_v44, 9 }
  0x6c   : > { %3150 = vmatmul.mubr.msk.bf16.gmra.mrb[8].mxu1 %vm415_vm3, %v2787_v22  ;;  %3422 = vmatprep.subr.msk.bf16.mxu0 %vm440_vm0, %v4030_v38  ;;  %v2047_v22 = vshrl.u32 %v2966_v61, 16  ;;  %v785_v61 = vrot.slane %v783_v15, 4  ;;  %v2052_v54 = vrot.slane %v2050_v57, 5  ;;  %v2086_v57 = vrot.slane %v2084_v34, 4  ;;  %v2975_v34 = vld [vmem:[%s3557_s24 + $0x48] sm:$0xf] }
  0x6d   : > { %3153 = vmatprep.mubr.msk.bf16.mxu1 %vm415_vm3, %v2788_v56  ;;  %v2074_v56 = vshll.u32 %v2969_v55, 16  ;;  %v4085_v19 = vsel %vm3751_vm7, %v2805_v4, %v783_v15  ;;  %v2062_v55 = vrot.slane %v2060_v43, 4  ;;  %v2073_v44 = vrot.slane %v2071_v18, 4  ;;  %v4111_v43 = vld [vmem:[%s3557_s24 + $0x40] sm:$0xf] }
  0x6e   : > { %v2049_v39 = vrot.slane %v2047_v22, 4  ;;  %v4102_v22 = vrot.slane %v2080_v48, 5  ;;  %v3462_v18 = vld [vmem:[%s3557_s24 + $0x60] sm:$0xff]   ;;  %v2045_v4 = vsel %vm3596_vm4, %v2040_v37, %v2044_v52  ;;  %v2066_v48 = vshll.u32 %v4093_v36, 16 }
  0x6f   : > { %v2119_v52 = vshrl.u32 %v2975_v34, 16  ;;  %v2122_v37 = vshll.u32 %v2975_v34, 16 }
  0x70   : > { %v2053_v15 = vor.u32 %v2052_v54, %v2049_v39  ;;  %v2087_v63 = vor.u32 %v2086_v57, %v4102_v22  ;;  %v2978_v57 = vld [vmem:[%s3557_s24 + $0x54] sm:$0xf] }
  0x71   : > { %v2121_v50 = vrot.slane %v2119_v52, 4  ;;  %v2146_v34 = vshll.u32 %v2978_v57, 16 }
  0x72   : > { %3236 = vmatmul.mubr.msk.bf16.gmra.mrb[4].mxu0 %vm415_vm3, %v3459_v20  ;;  %v2076_v20 = vrot.slane %v2074_v56, 5  ;;  %v2035_v56 = vsel %vm3596_vm4, %v2030_v53, %v4044_v11  ;;  %v2104_v11 = vshll.u32 %v4111_v43, 16  ;;  %v2108_v53 = vshrl.u32 %v4111_v43, 16 }
  0x73   : > { %3239 = vmatprep.mubr.msk.bf16.mxu0 %vm415_vm3, %v3460_v1  ;;  %v2090_v1 = vshll.u32 %v4100_v21, 16  ;;  %v2988_v54 = vcombine.low %v2035_v56, %v2045_v4  ;;  %v2088_v56 = vrot.slane %v2087_v63, 4  ;;  %v4158_v63 = vld [vmem:[%s3557_s24 + $0x50] sm:$0x1] }
  0x74   : > { %3154 = vmatmul.mubr.msk.bf16.gmra.mrb[12].mxu1 %vm415_vm3, %v2789_v10  ;;  %v4097_v10 = vsel %vm3751_vm7, %v785_v61, %v786_v16  ;;  %v4122_v16 = vld [vmem:[%s3557_s24 + $0x4c] sm:$0xf]  ;;  %v2063_v61 = vor.u32 %v2062_v55, %v4089_v26  ;;  %v2077_v6 = vor.u32 %v2076_v20, %v2073_v44  ;;  %v2054_v55 = vrot.slane %v2053_v15, 4 }
  0x75   : > { %3159 = vmatprep.mubr.msk.bf16.mxu1 %vm415_vm3, %v2807_v41  ;;  %v2972_v41 = vld [vmem:[%s3557_s24 + $0x3c] sm:$0xf]  ;;  %v2128_v39 = vshll.u32 %v4122_v16, 16  ;;  %v2068_v44 = vrot.slane %v2066_v48, 5  ;;  %v2132_v20 = vshrl.u32 %v4122_v16, 16  ;;  %v2092_v33 = vrot.slane %v2090_v1, 5 }
  0x76   : > { %v2095_v49 = vshrl.u32 %v2972_v41, 16  ;;  %v2098_v13 = vshll.u32 %v2972_v41, 16  ;;  %v2064_v41 = vrot.slane %v2063_v61, 4  ;;  %v4146_v15 = vrot.slane %v2104_v11, 5 }
  0x77   : > { %v2110_v48 = vrot.slane %v2108_v53, 4  ;;  %v2143_v1 = vshrl.u32 %v2978_v57, 16  ;;  %v1311_v11 = vshll.u32 %v3872_v59, 16  ;;  %v2059_v53 = vsel %vm3596_vm4, %v2054_v55, %v4089_v26 }
  0x78   : > { %v2097_v25 = vrot.slane %v2095_v49, 4  ;;  %v2100_v4 = vrot.slane %v2098_v13, 5  ;;  %v4155_v49 = vrot.slane %v2128_v39, 5  ;;  %v2134_v13 = vrot.slane %v2132_v20, 4 }
  0x79   : > { %v2069_v52 = vsel %vm3596_vm4, %v2064_v41, %v2068_v44  ;;  %v2111_v57 = vor.u32 %v2110_v48, %v4146_v15  ;;  %v2093_v26 = vsel %vm3596_vm4, %v2088_v56, %v2092_v33  ;;  %v2145_v44 = vrot.slane %v2143_v1, 4  ;;  %v4196_v56 = vld [vmem:[%s3557_s24 + $0x5c] sm:$0x1] }
  0x7a   : > { %3240 = vmatmul.mubr.msk.bf16.gmra.mrb[8].mxu0 %vm415_vm3, %v3461_v40  ;;  %v2078_v40 = vrot.slane %v2077_v6, 4  ;;  %v2101_v20 = vor.u32 %v2100_v4, %v2097_v25  ;;  %v2135_v41 = vor.u32 %v2134_v13, %v4155_v49  ;;  %v4441_v33 = vcombine.low %v3982_v2, %v3997_v9 }
  0x7b   : > { %3243 = vmatprep.mubr.msk.bf16.mxu0 %vm415_vm3, %v3462_v18  ;;  %v3463_v18 = vld [vmem:[%s3557_s24 + $0x6c] sm:$0xff]   ;;  %v2167_v4 = vshrl.u32 %v2981_v7, 16  ;;  %v1315_v48 = vshrl.u32 %v3872_v59, 16  ;;  %v2989_v13 = vcombine.low %v2059_v53, %v2069_v52 }
  0x7c   : > { %3160 = vmatmul.mubr.msk.bf16.vlgmr.msra.gmra.mrb[0].mxu1 %vm415_vm3, %v2808_v27  ;;  %v4143_v27 = vld [vmem:[%s3557_s24 + $0x58] sm:$0xf]  ;;  %v2083_v39 = vsel %vm3596_vm4, %v2078_v40, %v4102_v22  ;;  %v4440_v22 = vcombine.low %v3976_v58, %v3988_v23  ;;  %v2148_v40 = vrot.slane %v2146_v34, 5  ;;  %v2170_v58 = vshll.u32 %v2981_v7, 16 }
  0x7d   : > { %3176 = vmatpush3.bf16.msra.mxu1 %v1042_v28  ;;  %3163 = vmatprep.mubr.msk.bf16.mxu1 %vm415_vm3, %v2809_v29  ;;  %v3472_v28 = vld [vmem:[%s4425_s1 + $0x8] sm:$0x3]  ;;  %v2124_v29 = vrot.slane %v2122_v37, 5  ;;  %v2152_v61 = vshll.u32 %v4143_v27, 16  ;;  %v2156_v6 = vshrl.u32 %v4143_v27, 16  ;;  %v2523_v37 = vsel %vm440_vm0, %v4030_v38, 0 }
  0x7e   : > { %3418 = vmatprep.subr.msk.bf16.mxu1 %vm440_vm0, %v3472_v28  ;;  %v2114_v28 = vshll.u32 %v4153_v46, 16  ;;  %v2138_v38 = vshll.u32 %v4158_v63, 16  ;;  %v2176_v23 = vshll.u32 %v4177_v60, 16  ;;  %v2990_v34 = vcombine.low %v2083_v39, %v2093_v26 }
  0x7f   : > { %v2125_v55 = vor.u32 %v2124_v29, %v2121_v50  ;;  %v4189_v25 = vrot.slane %v2152_v61, 5  ;;  %v2102_v50 = vrot.slane %v2101_v20, 4  ;;  %v2112_v29 = vrot.slane %v2111_v57, 4 }
  0x80   : > { %v2116_v1 = vrot.slane %v2114_v28, 5  ;;  %v2140_v9 = vrot.slane %v2138_v38, 5  ;;  %v2136_v61 = vrot.slane %v2135_v41, 4  ;;  %v2162_v7 = vshll.u32 %v4196_v56, 16  ;;  %v4217_v28 = vld [vmem:[%s3557_s24 + $0x68] sm:$0x1] }
  0x81   : > { %v2126_v2 = vrot.slane %v2125_v55, 4  ;;  %v2169_v35 = vrot.slane %v2167_v4, 4  ;;  %v4207_v59 = vrot.slane %v2176_v23, 5  ;;  %v4209_v57 = vrot.slane %v1311_v11, 5 }
  0x82   : > { %3244 = vmatmul.mubr.msk.bf16.gmra.mrb[12].mxu0 %vm415_vm3, %v3463_v18  ;;  %v2158_v18 = vrot.slane %v2156_v6, 4  ;;  %v2149_v6 = vor.u32 %v2148_v40, %v2145_v44  ;;  %v1317_v53 = vrot.slane %v1315_v48, 4  ;;  %v2107_v52 = vsel %vm3596_vm4, %v2102_v50, %v4146_v15 }
  0x83   : > { %3249 = vmatprep.mubr.msk.bf16.mxu0 %vm415_vm3, %v2988_v54  ;;  %v2180_v54 = vshrl.u32 %v4177_v60, 16  ;;  %v2172_v60 = vrot.slane %v2170_v58, 5  ;;  %v2117_v39 = vsel %vm3596_vm4, %v2112_v29, %v2116_v1  ;;  %v2200_v38 = vshll.u32 %v4205_v12, 16  ;;  %v3464_v1 = vld [vmem:[%s3557_s24 + $0xc] sm:$0xff]  }
  0x84   : > { %3164 = vmatmul.mubr.msk.bf16.gmra.mrb[4].mxu1 %vm415_vm3, %v4440_v22  ;;  %v2159_v22 = vor.u32 %v2158_v18, %v4189_v25  ;;  %v2204_v44 = vshrl.u32 %v4205_v12, 16  ;;  %v4442_v11 = vcombine.low %v4016_v47, %v4034_v51  ;;  %v2131_v15 = vsel %vm3596_vm4, %v2126_v2, %v4155_v49 }
  0x85   : > { %3167 = vmatprep.mubr.msk.bf16.mxu1 %vm415_vm3, %v4441_v33  ;;  %v2984_v33 = vld [vmem:[%s3557_s24 + $0x6c] sm:$0xf]  ;;  %v2182_v20 = vrot.slane %v2180_v54, 4  ;;  %v2141_v41 = vsel %vm3596_vm4, %v2136_v61, %v2140_v9  ;;  %v2150_v40 = vrot.slane %v2149_v6, 4  ;;  %v2164_v18 = vrot.slane %v2162_v7, 5 }
  0x86   : > { %v2191_v26 = vshrl.u32 %v2984_v33, 16  ;;  %v2194_v55 = vshll.u32 %v2984_v33, 16  ;;  %v4443_v4 = vcombine.low %v4055_v62, %v4067_v24  ;;  %v2160_v47 = vrot.slane %v2159_v22, 4  ;;  %v2871_v22 = vld [vmem:[%s3557_s24 + $0x48] sm:$0xf] }
  0x87   : > { %v2173_v51 = vor.u32 %v2172_v60, %v2169_v35  ;;  %v2186_v49 = vshll.u32 %v4217_v28, 16  ;;  %v1318_v58 = vor.u32 %v1317_v53, %v4209_v57  ;;  %v1321_v23 = vshll.u32 %v3875_v0, 16  ;;  %v4246_v60 = vld [vmem:[%s3557_s24 + $0x74] sm:$0x1] }
  0x88   : > { %v2991_v54 = vcombine.low %v2107_v52, %v2117_v39  ;;  %v2193_v48 = vrot.slane %v2191_v26, 4  ;;  %v2196_v62 = vrot.slane %v2194_v55, 5  ;;  %v4240_v24 = vrot.slane %v2200_v38, 5 }
  0x89   : > { %v2206_v50 = vrot.slane %v2204_v44, 4  ;;  %v2992_v29 = vcombine.low %v2131_v15, %v2141_v41  ;;  %v2155_v35 = vsel %vm3596_vm4, %v2150_v40, %v4189_v25  ;;  %v2174_v0 = vrot.slane %v2173_v51, 4  ;;  %v3466_v51 = vld [vmem:[%s3557_s24 + $0x24] sm:$0xff]  }
  0x8a   : > { %3250 = vmatmul.mubr.msk.bf16.vlgmr.msra.gmra.mrb[0].mxu0 %vm415_vm3, %v2989_v13  ;;  %v2165_v13 = vsel %vm3596_vm4, %v2160_v47, %v2164_v18  ;;  %v2188_v2 = vrot.slane %v2186_v49, 5  ;;  %v1319_v9 = vrot.slane %v1318_v58, 4  ;;  %v1323_v61 = vrot.slane %v1321_v23, 5 }
  0x8b   : > { %3266 = vmatpush3.bf16.msra.mxu0 %v2523_v37  ;;  %3253 = vmatprep.mubr.msk.bf16.mxu0 %vm415_vm3, %v2990_v34  ;;  %v2183_v37 = vor.u32 %v2182_v20, %v4207_v59  ;;  %v2416_v6 = vrot.slane %v4004_v31, 5  ;;  %v2197_v7 = vor.u32 %v2196_v62, %v2193_v48  ;;  %v2207_v33 = vor.u32 %v2206_v50, %v4240_v24  ;;  %v3004_v20 = vld [vmem:[%s3557_s24 + $0x18] sm:$0xe]  ;;  %v3006_v62 = vld [vmem:[%s3557_s24 + $0x30] sm:$0xe] }
  0x8c   : > { %3168 = vmatmul.mubr.msk.bf16.gmra.mrb[8].mxu1 %vm415_vm3, %v4442_v11  ;;  %v2210_v25 = vshll.u32 %v4246_v60, 16  ;;  %v4444_v53 = vcombine.low %v4085_v19, %v4097_v10  ;;  %v2993_v52 = vcombine.low %v2155_v35, %v2165_v13  ;;  %v2179_v31 = vsel %vm3596_vm4, %v2174_v0, %v4207_v59  ;;  %v3465_v59 = vld [vmem:[%s3557_s24 + $0x18] sm:$0xff]  }
  0x8d   : > { %3171 = vmatprep.mubr.msk.bf16.mxu1 %vm415_vm3, %v4443_v4  ;;  %v2184_v34 = vrot.slane %v2183_v37, 4  ;;  %v1302_v26 = vshrl.u32 %v2871_v22, 16  ;;  %v1305_v55 = vshll.u32 %v2871_v22, 16  ;;  %v3012_v19 = vrot.slane %v3004_v20, 9  ;;  %v2868_v4 = vld [vmem:[%s3557_s24 + $0x3c] sm:$0xf] }
  0x8e   : > { %v2418_v10 = vrot.slane %v2416_v6, 4  ;;  %v2419_v38 = vrot.slane %v4038_v30, 5  ;;  %v1324_v44 = vsel %vm3596_vm4, %v1319_v9, %v1323_v61  ;;  %v2198_v11 = vrot.slane %v2197_v7, 4  ;;  %v3005_v30 = vld [vmem:[%s3557_s24 + $0x24] sm:$0xe]  ;;  %v3467_v22 = vld [vmem:[%s3557_s24 + $0x30] sm:$0xff]  }
  0x8f   : > { %v2189_v39 = vsel %vm3596_vm4, %v2184_v34, %v2188_v2  ;;  %v2208_v15 = vrot.slane %v2207_v33, 4  ;;  %v2212_v41 = vrot.slane %v2210_v25, 5  ;;  %v1304_v40 = vrot.slane %v1302_v26, 4  ;;  %v3468_v20 = vld [vmem:[%s3557_s24 + $0x3c] sm:$0xff]   ;;  %v2874_v26 = vld [vmem:[%s3557_s24 + $0x54] sm:$0xf] }
  0x90   : > { %v2994_v18 = vcombine.low %v2179_v31, %v2189_v39  ;;  %v1307_v47 = vrot.slane %v1305_v55, 5  ;;  %v2417_v37 = vsel %vm3751_vm7, %v3012_v19, %v2416_v6  ;;  %v2420_v49 = vsel %vm3751_vm7, %v2418_v10, %v2419_v38  ;;  %v3008_v38 = vld [vmem:[%s3557_s24 + $0x48] sm:$0xe] }
  0x91   : > { %v2423_v58 = vrot.slane %v4051_v14, 5  ;;  %v2213_v48 = vsel %vm3596_vm4, %v2208_v15, %v2212_v41  ;;  %v2430_v50 = vrot.slane %v4070_v8, 5  ;;  %v1281_v35 = vshll.u32 %v2868_v4, 16 }
  0x92   : > { %3254 = vmatmul.mubr.msk.bf16.gmra.mrb[4].mxu0 %vm415_vm3, %v2991_v54  ;;  %v1308_v23 = vor.u32 %v1307_v47, %v1304_v40  ;;  %v2203_v54 = vsel %vm3596_vm4, %v2198_v11, %v4240_v24  ;;  %v1287_v14 = vshll.u32 %v3854_v42, 16  ;;  %v3013_v24 = vrot.slane %v3005_v30, 9 }
  0x93   : > { %3257 = vmatprep.mubr.msk.bf16.mxu0 %vm415_vm3, %v2992_v29  ;;  %v1278_v29 = vshrl.u32 %v2868_v4, 16  ;;  %v2426_v8 = vrot.slane %v4093_v36, 5  ;;  %v3021_v0 = vcombine.low %v2417_v37, %v2420_v49  ;;  %v2425_v34 = vrot.slane %v2423_v58, 4  ;;  %v3469_v37 = vld [vmem:[%s3557_s24 + $0x48] sm:$0xff]  }
  0x94   : > { %3172 = vmatmul.mubr.msk.bf16.gmra.mrb[12].mxu1 %vm415_vm3, %v4444_v53  ;;  %v1309_v13 = vrot.slane %v1308_v23, 4  ;;  %v3014_v2 = vrot.slane %v3006_v62, 9  ;;  %v2995_v61 = vcombine.low %v2203_v54, %v2213_v48  ;;  %v2432_v6 = vrot.slane %v2430_v50, 4  ;;  %v3470_v23 = vld [vmem:[%s3557_s24 + $0x54] sm:$0xff]  }
  0x95   : > { %3177 = vmatprep.mubr.msk.bf16.mxu1 %vm415_vm3, %v3464_v1  ;;  %v1291_v1 = vshrl.u32 %v3854_v42, 16  ;;  %v2433_v42 = vrot.slane %v4100_v21, 5  ;;  %v1280_v7 = vrot.slane %v1278_v29, 4  ;;  %v1283_v33 = vrot.slane %v1281_v35, 5 }
  0x96   : > { %v1314_v9 = vsel %vm3596_vm4, %v1309_v13, %v4209_v57  ;;  %v4302_v25 = vrot.slane %v1287_v14, 5  ;;  %v2424_v53 = vsel %vm3751_vm7, %v3013_v24, %v2423_v58  ;;  %v2427_v57 = vsel %vm3751_vm7, %v2425_v34, %v2426_v8  ;;  %v3009_v24 = vld [vmem:[%s3557_s24 + $0x54] sm:$0xe]  ;;  %v4445_v8 = vld [vmem:[#allocation5_spill] sm:$0xff] }
  0x97   : > { %v1293_v36 = vrot.slane %v1291_v1, 4  ;;  %v2431_v21 = vsel %vm3751_vm7, %v3014_v2, %v2430_v50  ;;  %v2437_v31 = vrot.slane %v4111_v43, 5  ;;  %v1297_v39 = vshll.u32 %v3857_v45, 16  ;;  %v2877_v50 = vld [vmem:[%s3557_s24 + $0x60] sm:$0xf] }
  0x98   : > { %v2434_v55 = vsel %vm3751_vm7, %v2432_v6, %v2433_v42  ;;  %v1284_v19 = vor.u32 %v1283_v33, %v1280_v7  ;;  %v3022_v43 = vcombine.low %v2424_v53, %v2427_v57  ;;  %v2440_v11 = vrot.slane %v4153_v46, 5  ;;  %v4447_v33 = vld [vmem:[#allocation2_spill] sm:$0xff] }
  0x99   : > { %v1294_v10 = vor.u32 %v1293_v36, %v4302_v25  ;;  %v1326_v15 = vshrl.u32 %v2874_v26, 16  ;;  %v1329_v41 = vshll.u32 %v2874_v26, 16  ;;  %v1335_v40 = vshll.u32 %v3883_v17, 16 }
  0x9a   : > { %3258 = vmatmul.mubr.msk.bf16.gmra.mrb[8].mxu0 %vm415_vm3, %v2993_v52  ;;  %v3007_v52 = vld [vmem:[%s3557_s24 + $0x3c] sm:$0xe]  ;;  %v2439_v4 = vrot.slane %v2437_v31, 4  ;;  %v1299_v47 = vrot.slane %v1297_v39, 5  ;;  %v2447_v58 = vrot.slane %v4158_v63, 5  ;;  %v2451_v63 = vrot.slane %v4143_v27, 5 }
  0x9b   : > { %3261 = vmatprep.mubr.msk.bf16.mxu0 %vm415_vm3, %v2994_v18  ;;  %v3015_v45 = vrot.slane %v3007_v52, 9  ;;  %v3023_v18 = vcombine.low %v2431_v21, %v2434_v55  ;;  %v1295_v49 = vrot.slane %v1294_v10, 4  ;;  %v1328_v46 = vrot.slane %v1326_v15, 4  ;;  %v3010_v27 = vld [vmem:[%s3557_s24 + $0x60] sm:$0xe] }
  0x9c   : > { %3178 = vmatmul.mubr.msk.bf16.vlgmr.msra.gmra.mrb[0].mxu1 %vm415_vm3, %v3465_v59  ;;  %v1339_v59 = vshrl.u32 %v3883_v17, 16  ;;  %v1331_v54 = vrot.slane %v1329_v41, 5  ;;  %v1337_v48 = vrot.slane %v1335_v40, 5  ;;  %v2441_v29 = vsel %vm3751_vm7, %v2439_v4, %v2440_v11  ;;  %v3471_v52 = vld [vmem:[%s3557_s24 + $0x60] sm:$0xff]  }
  0x9d   : > { %3284 = vmatpush3.bf16.msra.mxu1 %v3540_v3  ;;  %3181 = vmatprep.mubr.msk.bf16.mxu1 %vm415_vm3, %v3466_v51  ;;  %v4299_v3 = vcombine.low %v1314_v9, %v1324_v44  ;;  %v2444_v44 = vrot.slane %v4122_v16, 5  ;;  %v3016_v51 = vrot.slane %v3008_v38, 9  ;;  %v1285_v16 = vrot.slane %v1284_v19, 4  ;;  %v4446_v9 = vld [vmem:[#allocation3_spill] sm:$0xff] }
  0x9e   : > { %v1341_v62 = vrot.slane %v1339_v59, 4  ;;  %v2438_v17 = vsel %vm3751_vm7, %v3015_v45, %v2437_v31  ;;  %v1300_v1 = vsel %vm3596_vm4, %v1295_v49, %v1299_v47  ;;  %v1350_v34 = vshrl.u32 %v2877_v50, 16  ;;  %v3011_v47 = vld [vmem:[%s3557_s24 + $0x6c] sm:$0xe] }
  0x9f   : > { %v2446_v30 = vrot.slane %v2444_v44, 4  ;;  %v2445_v35 = vsel %vm3751_vm7, %v3016_v51, %v2444_v44  ;;  %v1290_v14 = vsel %vm3596_vm4, %v1285_v16, %v4302_v25  ;;  %v1353_v2 = vshll.u32 %v2877_v50, 16 }
  0xa0   : > { %v1363_v6 = vshrl.u32 %v4446_v9, 16  ;;  %v3024_v42 = vcombine.low %v2438_v17, %v2441_v29  ;;  %v1342_v7 = vor.u32 %v1341_v62, %v1337_v48  ;;  %v1345_v25 = vshll.u32 %v4447_v33, 16 }
  0xa1   : > { %v2448_v13 = vsel %vm3751_vm7, %v2446_v30, %v2447_v58  ;;  %v2453_v53 = vrot.slane %v2451_v63, 4  ;;  %v2454_v57 = vrot.slane %v4196_v56, 5  ;;  %v2885_v21 = vcombine.low %v1290_v14, %v1300_v1 }
  0xa2   : > { %3262 = vmatmul.mubr.msk.bf16.gmra.mrb[12].mxu0 %vm415_vm3, %v2995_v61  ;;  %v1359_v61 = vshll.u32 %v4446_v9, 16  ;;  %v3025_v36 = vcombine.low %v2445_v35, %v2448_v13  ;;  %v3018_v31 = vrot.slane %v3010_v27, 9  ;;  %v2461_v26 = vrot.slane %v4217_v28, 5 }
  0xa3   : > { %3267 = vmatprep.mubr.msk.bf16.mxu0 %vm415_vm3, %v3021_v0  ;;  %v2458_v0 = vrot.slane %v4445_v8, 5  ;;  %v1352_v55 = vrot.slane %v1350_v34, 4  ;;  %v1355_v19 = vrot.slane %v1353_v2, 5  ;;  %v1365_v38 = vrot.slane %v1363_v6, 4 }
  0xa4   : > { %3182 = vmatmul.mubr.msk.bf16.gmra.mrb[4].mxu1 %vm415_vm3, %v3467_v22  ;;  %v1332_v22 = vor.u32 %v1331_v54, %v1328_v46  ;;  %v1361_v10 = vrot.slane %v1359_v61, 5  ;;  %v1347_v45 = vrot.slane %v1345_v25, 5  ;;  %v2455_v28 = vsel %vm3751_vm7, %v2453_v53, %v2454_v57 }
  0xa5   : > { %3185 = vmatprep.mubr.msk.bf16.mxu1 %vm415_vm3, %v3468_v20  ;;  %v3017_v20 = vrot.slane %v3009_v24, 9  ;;  %v2460_v39 = vrot.slane %v2458_v0, 4  ;;  %v2459_v11 = vsel %vm3751_vm7, %v3018_v31, %v2458_v0  ;;  %v2465_v15 = vrot.slane %v4205_v12, 5 }
  0xa6   : > { %v1333_v44 = vrot.slane %v1332_v22, 4  ;;  %v1356_v40 = vor.u32 %v1355_v19, %v1352_v55  ;;  %v1366_v59 = vor.u32 %v1365_v38, %v1361_v10  ;;  %v3019_v30 = vrot.slane %v3011_v47, 9 }
  0xa7   : > { %v2452_v56 = vsel %vm3751_vm7, %v3017_v20, %v2451_v63  ;;  %v2462_v41 = vsel %vm3751_vm7, %v2460_v39, %v2461_v26  ;;  %v2467_v12 = vrot.slane %v2465_v15, 4  ;;  %v2468_v58 = vrot.slane %v4246_v60, 5 }
  0xa8   : > { %v1338_v51 = vsel %vm3596_vm4, %v1333_v44, %v1337_v48  ;;  %v3026_v16 = vcombine.low %v2452_v56, %v2455_v28  ;;  %v3027_v49 = vcombine.low %v2459_v11, %v2462_v41  ;;  %v1357_v46 = vrot.slane %v1356_v40, 4 }
  0xa9   : > { %v1367_v54 = vrot.slane %v1366_v59, 4  ;;  %v2466_v48 = vsel %vm3751_vm7, %v3019_v30, %v2465_v15  ;;  %v2469_v50 = vsel %vm3751_vm7, %v2467_v12, %v2468_v58 }
  0xaa   : > { %3268 = vmatmul.mubr.msk.bf16.vlgmr.msra.gmra.mrb[0].mxu0 %vm415_vm3, %v3022_v43  ;;  %v1343_v43 = vrot.slane %v1342_v7, 4  ;;  %v1362_v60 = vsel %vm3596_vm4, %v1357_v46, %v1361_v10  ;;  %v3028_v29 = vcombine.low %v2466_v48, %v2469_v50 }
  0xab   : > { %3271 = vmatprep.mubr.msk.bf16.mxu0 %vm415_vm3, %v3023_v18  ;;  %v4448_v18 = vld [vmem:[#allocation4_spill] sm:$0xff] }
  0xac   : > { %3186 = vmatmul.mubr.msk.bf16.gmra.mrb[8].mxu1 %vm415_vm3, %v3469_v37  ;;  %v1369_v4 = vshll.u32 %v4448_v18, 16  ;;  %v1348_v37 = vsel %vm3596_vm4, %v1343_v43, %v1347_v45 }
  0xad   : > { %3189 = vmatprep.mubr.msk.bf16.mxu1 %vm415_vm3, %v3470_v23  ;;  %v2887_v23 = vcombine.low %v1338_v51, %v1348_v37 }
  0xae   : > { %v1371_v62 = vrot.slane %v1369_v4, 5 }
  0xb0   : > { %v1372_v17 = vsel %vm3596_vm4, %v1367_v54, %v1371_v62 }
  0xb1   : > { %v2888_v35 = vcombine.low %v1362_v60, %v1372_v17 }
  0xb2   : > { %3272 = vmatmul.mubr.msk.bf16.gmra.mrb[4].mxu0 %vm415_vm3, %v3024_v42 }
  0xb3   : > { %3275 = vmatprep.mubr.msk.bf16.mxu0 %vm415_vm3, %v3025_v36 }
  0xb4   : > { %3190 = vmatmul.mubr.msk.bf16.gmra.mrb[12].mxu1 %vm415_vm3, %v3471_v52 }
  0xb5   : > { %3203 = vmatprep.mubr.msk.bf16.mxu1 %vm415_vm3, %v2885_v21 }
  0xba   : > { %3276 = vmatmul.mubr.msk.bf16.gmra.mrb[8].mxu0 %vm415_vm3, %v3026_v16 }
  0xbb   : > { %3279 = vmatprep.mubr.msk.bf16.mxu0 %vm415_vm3, %v3027_v49 }
  0xbc   : > { %3204 = vmatmul.mubr.msk.bf16.vlgmr.msra.gmra.mrb[8].mxu1 %vm415_vm3, %v4299_v3 }
  0xbd   : > { %3207 = vmatprep.mubr.msk.bf16.mxu1 %vm415_vm3, %v2887_v23 }
  0xc2   : > { %3280 = vmatmul.mubr.msk.bf16.gmra.mrb[12].mxu0 %vm415_vm3, %v3028_v29 }
  0xc4   : > { %3208 = vmatmul.mubr.msk.bf16.gmra.mrb[12].mxu1 %vm415_vm3, %v2888_v35 }
 0x16f   : > { %v3179_v3 = vpop.f32.mrb[0].mxu1 }
 0x170   : > { %v1078_v63 = vpop.f32.mrb[1].mxu1 }
 0x171   : > { %v3180_v14 = vpop.f32.mrb[2].mxu1 }
 0x172   : > { %v1081_v5 = vpop.f32.mrb[3].mxu1 }
 0x177   : > { %v3183_v1 = vpop.f32.mrb[4].mxu1 }
 0x178   : > { %v1094_v13 = vpop.f32.mrb[5].mxu1 }
 0x179   : > { %v3184_v24 = vpop.f32.mrb[6].mxu1 }
 0x17a   : > { %v1097_v8 = vpop.f32.mrb[7].mxu1 }
 0x17d   : > { %v3269_v32 = vpop.f32.mrb[0].mxu0 }
 0x17e   : > { %v3285_v0 = vadd.f32 %v3269_v32, %v3179_v3  ;;  %v2559_v27 = vpop.f32.mrb[1].mxu0 }
 0x17f   : > { %v3286_v34 = vadd.f32 %v2559_v27, %v1078_v63  ;;  %v3270_v2 = vpop.f32.mrb[2].mxu0 }
 0x180   : > { %2640 = vst [vmem:[%s4397_s16 + $0x10] sm:$0xff] %v3285_v0  ;;  %v3287_v9 = vadd.f32 %v3270_v2, %v3180_v14  ;;  %v2562_v61 = vpop.f32.mrb[3].mxu0 }
 0x181   : > { %2638 = vst [vmem:[%s4397_s16] sm:$0xff] %v3286_v34  ;;  %v3288_v6 = vadd.f32 %v2562_v61, %v1081_v5 }
 0x182   : > { %2641 = vst [vmem:[%s4397_s16 + $0x18] sm:$0xff] %v3287_v9 }
 0x183   : > { %2639 = vst [vmem:[%s4397_s16 + $0x8] sm:$0xff] %v3288_v6 }
 0x185   : > { %v3273_v42 = vpop.f32.mrb[4].mxu0 }
 0x186   : > { %v3289_v22 = vadd.f32 %v3273_v42, %v3183_v1  ;;  %v2575_v7 = vpop.f32.mrb[5].mxu0 }
 0x187   : > { %v3290_v33 = vadd.f32 %v2575_v7, %v1094_v13  ;;  %v3274_v25 = vpop.f32.mrb[6].mxu0 }
 0x188   : > { %2644 = vst [vmem:[%s4397_s16 + $0x30] sm:$0xff] %v3289_v22  ;;  %v3291_v36 = vadd.f32 %v3274_v25, %v3184_v24  ;;  %v2578_v20 = vpop.f32.mrb[7].mxu0 }
 0x189   : > { %2642 = vst [vmem:[%s4397_s16 + $0x20] sm:$0xff] %v3290_v33  ;;  %v3292_v53 = vadd.f32 %v2578_v20, %v1097_v8 }
 0x18a   : > { %2645 = vst [vmem:[%s4397_s16 + $0x38] sm:$0xff] %v3291_v36 }
 0x18b   : > { %2643 = vst [vmem:[%s4397_s16 + $0x28] sm:$0xff] %v3292_v53 }
 0x18d   : > { %v3277_v57 = vpop.f32.mrb[8].mxu0 }
 0x18e   : > { %v2591_v21 = vpop.f32.mrb[9].mxu0 }
 0x18f   : > { %v3205_v52 = vpop.f32.mrb[8].mxu1  ;;  %v3278_v26 = vpop.f32.mrb[10].mxu0 }
 0x190   : > { %v3293_v31 = vadd.f32 %v3277_v57, %v3205_v52  ;;  %v1494_v39 = vpop.f32.mrb[9].mxu1  ;;  %v2594_v10 = vpop.f32.mrb[11].mxu0 }
 0x191   : > { %v3294_v55 = vadd.f32 %v2591_v21, %v1494_v39  ;;  %v3206_v19 = vpop.f32.mrb[10].mxu1 }
 0x192   : > { %2648 = vst [vmem:[%s4397_s16 + $0x50] sm:$0xff] %v3293_v31  ;;  %v3295_v38 = vadd.f32 %v3278_v26, %v3206_v19  ;;  %v1497_v44 = vpop.f32.mrb[11].mxu1 }
 0x193   : > { %2646 = vst [vmem:[%s4397_s16 + $0x40] sm:$0xff] %v3294_v55  ;;  %v3296_v43 = vadd.f32 %v2594_v10, %v1497_v44 }
 0x194   : > { %2649 = vst [vmem:[%s4397_s16 + $0x58] sm:$0xff] %v3295_v38 }
 0x195   : > { %2647 = vst [vmem:[%s4397_s16 + $0x48] sm:$0xff] %v3296_v43  ;;  %v3281_v45 = vpop.f32.mrb[12].mxu0 }
 0x196   : > { %v2607_v28 = vpop.f32.mrb[13].mxu0 }
 0x197   : > { %v3209_v56 = vpop.f32.mrb[12].mxu1  ;;  %v3282_v41 = vpop.f32.mrb[14].mxu0 }
 0x198   : > { %v3297_v11 = vadd.f32 %v3281_v45, %v3209_v56  ;;  %v1510_v15 = vpop.f32.mrb[13].mxu1  ;;  %v2610_v18 = vpop.f32.mrb[15].mxu0 }
 0x199   : > { %v3298_v40 = vadd.f32 %v2607_v28, %v1510_v15  ;;  %v3210_v59 = vpop.f32.mrb[14].mxu1 }
 0x19a   : > { %2652 = vst [vmem:[%s4397_s16 + $0x70] sm:$0xff] %v3297_v11  ;;  %v3299_v4 = vadd.f32 %v3282_v41, %v3210_v59  ;;  %v1513_v47 = vpop.f32.mrb[15].mxu1 }
 0x19b   : > { %2650 = vst [vmem:[%s4397_s16 + $0x60] sm:$0xff] %v3298_v40  ;;  %v3300_v51 = vadd.f32 %v2610_v18, %v1513_v47 }
 0x19c   : > { %2653 = vst [vmem:[%s4397_s16 + $0x78] sm:$0xff] %v3299_v4 }
 0x19d   : > { %2651 = vst [vmem:[%s4397_s16 + $0x68] sm:$0xff] %v3300_v51 }
 0x19e PF: > { %s12_s11 = sadd.s32 1, %s3495_s11   ;;  %s4449_s9 = smov %s3491_s10 }
 0x19f   : > { %p9_p5 = scmp.ge.s32.totalorder %s12_s11, 6   ;;  %s4450_s10 = smov %s4452_s12 }
 0x1a1   :  { %11 = sbr.rel (!%p9_p5) target bundleno = 2 (0x2), region = 69 }

</bundles_post_ra>
